<compile_context>
chip_gen: v7x
topology: tpu7x:2x2x1
jax: 0.10.0
libtpu: 0.0.40
codegen_flags: <defaults>
</compile_context>

<pallas_src>
import functools

import numpy as np
import jax
import jax.numpy as jnp
from jax import lax
from jax.experimental import pallas as pl
from jax.experimental.pallas import tpu as pltpu

CHANNEL_SIZE = 4
NUM_CLASSES = 10
KSIZE = 5
LANE = 128  # TPU lane width


# ---------------------------------------------------------------------------
# One-time host-side weight folding (analogous to module __init__ / weight
# prep; NOT on the per-call critical path).
# ---------------------------------------------------------------------------
def fold_params(conv_w, conv_b, fc_w, fc_b, input_hw):
    """Fold Conv2d(C,1,k=5,valid) -> flatten -> Linear(OH*OW, NC) into a single
    affine map.  Returns (w_eff_padded (C*H*W, 128), b_eff_padded (1, 128))."""
    H, W = input_hw
    OH, OW = H - KSIZE + 1, W - KSIZE + 1
    cw = np.asarray(conv_w, np.float32)   # (1, C, 5, 5)
    cb = np.asarray(conv_b, np.float32)   # (1,)
    fw = np.asarray(fc_w, np.float32)     # (NC, OH*OW)
    fb = np.asarray(fc_b, np.float32)     # (NC,)
    C = cw.shape[1]
    nc = fw.shape[0]
    assert fw.shape[1] == OH * OW, "Linear in_features must equal OH*OW"

    # Conv as a matrix M (C*H*W, OH*OW):  flat_conv = x_flat @ M + conv_b
    M = np.zeros((C * H * W, OH * OW), np.float32)
    ii, jj = np.meshgrid(np.arange(OH), np.arange(OW), indexing="ij")
    cols = (ii * OW + jj).ravel()
    for c in range(C):
        for ki in range(KSIZE):
            for kj in range(KSIZE):
                rows = (c * H * W + (ii + ki) * W + (jj + kj)).ravel()
                M[rows, cols] += cw[0, c, ki, kj]

    w_eff = M @ fw.T                              # (C*H*W, NC)
    b_eff = cb[0] * fw.sum(axis=1) + fb           # (NC,)

    # Pad the class dim to 128 lanes -> lane-dense MXU output / unmasked stores.
    n_pad = max(LANE, ((nc + LANE - 1) // LANE) * LANE)
    w_pad = np.zeros((C * H * W, n_pad), np.float32)
    w_pad[:, :nc] = w_eff
    b_pad = np.zeros((1, n_pad), np.float32)
    b_pad[0, :nc] = b_eff
    return jnp.asarray(w_pad), jnp.asarray(b_pad)


# ---------------------------------------------------------------------------
# Fused forward kernel: one MXU matmul + bias, lane-dense everywhere.
# ---------------------------------------------------------------------------
def fused_kernel(x_ref, w_ref, b_ref, o_ref):
    # x_ref: (bt, K) f32; w_ref: (K, NPAD) f32; b_ref: (1, NPAD); o_ref: (bt, NPAD)
    o_ref[...] = (
        jnp.dot(x_ref[...], w_ref[...], preferred_element_type=jnp.float32)
        + b_ref[...]
    )


@functools.partial(jax.jit, static_argnames=("num_classes", "batch_block"))
def custom_cnn_forward(x, w_eff, b_eff, num_classes=NUM_CLASSES, batch_block=128):
    """x: (B, C, H, W) f32; w_eff: (C*H*W, NPAD); b_eff: (1, NPAD).
    Returns (B, num_classes) f32."""
    B = x.shape[0]
    K = w_eff.shape[0]
    NPAD = w_eff.shape[1]

    # Contiguous row-major reshape (free at the HLO level — pure metadata).
    x_flat = x.reshape(B, K)

    # Batch tile: whole batch when small; 128-row (sublane-aligned) tiles when
    # large so VMEM stays well under the 32 MiB scoped default on all gens
    # (x tile 2 MiB + W 2 MiB + out 64 KiB, double-buffered).
    bt = B if B <= batch_block else batch_block
    grid = (pl.cdiv(B, bt),)

    out = pl.pallas_call(
        fused_kernel,
        out_shape=jax.ShapeDtypeStruct((B, NPAD), jnp.float32),
        grid_spec=pltpu.PrefetchScalarGridSpec(
            num_scalar_prefetch=0,
            grid=grid,
            in_specs=[
                pl.BlockSpec((bt, K), lambda i: (i, 0)),
                pl.BlockSpec((K, NPAD), lambda i: (0, 0)),
                pl.BlockSpec((1, NPAD), lambda i: (0, 0)),
            ],
            out_specs=pl.BlockSpec((bt, NPAD), lambda i: (i, 0)),
        ),
        compiler_params=pltpu.CompilerParams(
            dimension_semantics=("parallel",),  # batch axis: megacore on v7x
        ),
    )(x_flat, w_eff, b_eff)

    return out[:, :num_classes]


# ---------------------------------------------------------------------------
# Pure-JAX reference (two-stage, matches the PyTorch module literally).
# ---------------------------------------------------------------------------
def reference_forward(x, conv_w, conv_b, fc_w, fc_b):
    conv = lax.conv_general_dilated(
        x, conv_w, window_strides=(1, 1), padding="VALID",
        dimension_numbers=("NCHW", "OIHW", "NCHW"),
        precision=lax.Precision.HIGHEST,
    ) + conv_b.reshape(1, 1, 1, 1)
    flat = conv.reshape(x.shape[0], -1)
    return jnp.dot(flat, fc_w.T, precision=lax.Precision.HIGHEST) + fc_b


if __name__ == "__main__":
    key = jax.random.PRNGKey(0)
    k_x, k_cw, k_cb, k_fw, k_fb = jax.random.split(key, 5)

    # Linear(784, 10) after a 5x5 valid conv forces 32x32 spatial input.
    B, H, W = 2, 32, 32
    x = jax.random.normal(k_x, (B, CHANNEL_SIZE, H, W), dtype=jnp.float32)

    # Deterministic parameters (shapes match the torch module's __init__).
    conv_w = 0.1 * jax.random.normal(k_cw, (1, CHANNEL_SIZE, KSIZE, KSIZE), jnp.float32)
    conv_b = 0.1 * jax.random.normal(k_cb, (1,), jnp.float32)
    fc_w = 0.05 * jax.random.normal(k_fw, (NUM_CLASSES, 784), jnp.float32)
    fc_b = 0.05 * jax.random.normal(k_fb, (NUM_CLASSES,), jnp.float32)

    # One-time host-side folding of (conv, fc) -> single padded affine map.
    w_eff, b_eff = fold_params(conv_w, conv_b, fc_w, fc_b, (H, W))

    out = custom_cnn_forward(x, w_eff, b_eff)
    out = jax.block_until_ready(out)

    ref = reference_forward(x, conv_w, conv_b, fc_w, fc_b)
    if not jnp.allclose(out, ref, atol=1e-3, rtol=1e-3):
        max_err = float(jnp.max(jnp.abs(out - ref)))
        raise AssertionError(f"Pallas output does not match reference (max err {max_err})")

    print("KERNEL_OK")
</pallas_src>

<mosaic_0001>
module attributes {stable_mosaic.version = 11 : i64} {
  func.func @fused_kernel(%arg0: i32, %arg1: memref<2x4096xf32, #tpu.memory_space<vmem>>, %arg2: memref<4096x128xf32, #tpu.memory_space<vmem>>, %arg3: memref<1x128xf32, #tpu.memory_space<vmem>>, %arg4: memref<2x128xf32, #tpu.memory_space<vmem>>) attributes {dimension_semantics = [#tpu.dimension_semantics<parallel>], iteration_bounds = array<i64: 1>, scalar_prefetch = 0 : i64, scratch_operands = 0 : i64, tpu.core_type = #tpu.core_type<tc>, window_params = [{transform_indices = @transform_0, window_bounds = array<i64: 2, 4096>}, {pipeline_mode = #tpu.pipeline_mode<synchronous>, transform_indices = @transform_1, window_bounds = array<i64: 4096, 128>}, {pipeline_mode = #tpu.pipeline_mode<synchronous>, transform_indices = @transform_2, window_bounds = array<i64: 1, 128>}, {transform_indices = @transform_3, window_bounds = array<i64: 2, 128>}]} {
    %c0 = arith.constant 0 : index
    %c0_0 = arith.constant 0 : index
    %0 = vector.load %arg1[%c0, %c0_0] : memref<2x4096xf32, #tpu.memory_space<vmem>>, vector<2x4096xf32>
    %c0_1 = arith.constant 0 : index
    %c0_2 = arith.constant 0 : index
    %1 = vector.load %arg2[%c0_1, %c0_2] : memref<4096x128xf32, #tpu.memory_space<vmem>>, vector<4096x128xf32>
    %cst = arith.constant dense<0.000000e+00> : vector<2x128xf32>
    %2 = tpu.matmul %0, %1, %cst {dimension_numbers = #tpu.dot_dimension_numbers<[1], [0], [0], [1], [0, 0, 1, 1], [], []>} : vector<2x4096xf32>, vector<4096x128xf32>, vector<2x128xf32> -> vector<2x128xf32>
    %c0_3 = arith.constant 0 : index
    %c0_4 = arith.constant 0 : index
    %3 = vector.load %arg3[%c0_3, %c0_4] : memref<1x128xf32, #tpu.memory_space<vmem>>, vector<1x128xf32>
    %4 = vector.broadcast %3 : vector<1x128xf32> to vector<2x128xf32>
    %5 = arith.addf %2, %4 : vector<2x128xf32>
    %c0_5 = arith.constant 0 : index
    %c0_6 = arith.constant 0 : index
    %6 = vector.load %arg4[%c0_5, %c0_6] : memref<2x128xf32, #tpu.memory_space<vmem>>, vector<2x128xf32>
    tpu.vector_store %arg4[%c0_5, %c0_6], %5 {strides = array<i32>} : memref<2x128xf32, #tpu.memory_space<vmem>>, vector<2x128xf32>,
    return
  }
  func.func @transform_0(%arg0: i32) -> (i32, i32) {
    %c0_i32 = arith.constant 0 : i32
    %c0_i32_0 = arith.constant 0 : i32
    return %arg0, %c0_i32 : i32, i32
  }
  func.func @transform_1(%arg0: i32) -> (i32, i32) {
    %c0_i32 = arith.constant 0 : i32
    %c0_i32_0 = arith.constant 0 : i32
    %c0_i32_1 = arith.constant 0 : i32
    return %c0_i32, %c0_i32_0 : i32, i32
  }
  func.func @transform_2(%arg0: i32) -> (i32, i32) {
    %c0_i32 = arith.constant 0 : i32
    %c0_i32_0 = arith.constant 0 : i32
    %c0_i32_1 = arith.constant 0 : i32
    return %c0_i32, %c0_i32_0 : i32, i32
  }
  func.func @transform_3(%arg0: i32) -> (i32, i32) {
    %c0_i32 = arith.constant 0 : i32
    %c0_i32_0 = arith.constant 0 : i32
    return %arg0, %c0_i32 : i32, i32
  }
}

</mosaic_0001>

<bundles_post_ra>
// kernel: custom_cnn_forward.1
= control target key start
LH: loop header
LB: loop body
LE: loop exit
PB: predicated region body
PF: predicated region fallthrough
CT: control target
= control target key end

     0   :  { %8 = vsyncpa [#allocation3], 0  ;;  %s3214_s0 = inlined_call_operand.vmem [shape: f32[2,4096], index: 0, kind: input, shape index: {}]   ;;  %s3215_s1 = inlined_call_operand.hbm [shape: f32[4096,128], index: 1, kind: input, shape index: {}]   ;;  %s3216_s2 = inlined_call_operand.hbm [shape: f32[1,128], index: 2, kind: input, shape index: {}]   ;;  %s3217_s3 = inlined_call_operand.hbm [shape: f32[2,128], index: 3, kind: output, shape index: {}]  }
   0x1   :  { %9 = vsyncpa [#allocation6], 0 }
   0x2   :  { %10 = vsyncpa [#allocation4], 0  ;;  %s3040_s12 = smov [#allocation2]   ;;  %s2968_s16 = scalar_lea.hbm %s3215_s1, 65536 }
   0x3   :  { %s18_s13 = sshll.u32 %s3040_s12, 4  ;;  %p2969_p0 = scmp.ne.s32.totalorder %s3215_s1, %s2968_s16  ;;  %s19_s13 = int_to_ptr.vmem [resolvable:$true] %s18_s13 }
   0x4   :  { %p2972_p1 = scmp.lt.u32.totalorder %s2968_s16, %s3215_s1 }
   0x6   :  { %p2974_p2 = pnand %p2972_p1, %p2969_p0 }
   0x8   :  { %2977 = shalt.err (!%p2974_p2)
}
   0x9   :  { %s2978_s21 = scalar_lea.vmem %s19_s13, 65536  ;;  %p2983_p4 = scmp.lt.s32.totalorder %s19_s13, %s19_s13 }
   0xa   :  { %p2979_p3 = scmp.ne.s32.totalorder %s19_s13, %s2978_s21  ;;  %p2984_p5 = scmp.lt.s32.totalorder %s2978_s21, %s2978_s21 }
   0xc   :  { %p2985_p6 = por %p2984_p5, %p2983_p4 }
   0xe   :  { %p2986_p7 = pnand %p2985_p6, %p2979_p3 }
  0x10   :  { %2989 = shalt.err (!%p2986_p7)
}
  0x11   :  { %s3041_s22 = smov 128   ;;  %s3042_s23 = smov 8  }
  0x12   :  { %24 = dma.hbm_to_vmem [thread:$0]  %s3215_s1, 65536, %s19_s13, [#allocation3], %s3041_s22, %s3041_s22, %s3042_s23  }
  0x13   :  { %s3043_s26 = smov [#allocation5]   ;;  %s2990_s30 = scalar_lea.hbm %s3216_s2, 16 }
  0x14   :  { %s31_s27 = sshll.u32 %s3043_s26, 4  ;;  %p2991_p8 = scmp.ne.s32.totalorder %s3216_s2, %s2990_s30  ;;  %s32_s27 = int_to_ptr.vmem [resolvable:$true] %s31_s27 }
  0x15   :  { %p2994_p9 = scmp.lt.u32.totalorder %s2990_s30, %s3216_s2 }
  0x17   :  { %p2996_p10 = pnand %p2994_p9, %p2991_p8 }
  0x19   :  { %2999 = shalt.err (!%p2996_p10)
}
  0x1a   :  { %s3000_s8 = scalar_lea.vmem %s32_s27, 16  ;;  %s3004_s1 = scalar_lea.vmem %s32_s27, 32 }
  0x1b   :  { %p3001_p11 = scmp.ne.s32.totalorder %s32_s27, %s3000_s8  ;;  %p3005_p12 = scmp.lt.s32.totalorder %s32_s27, %s32_s27 }
  0x1c   :  { %p3006_p13 = scmp.lt.s32.totalorder %s3004_s1, %s3000_s8 }
  0x1e   :  { %p3007_p0 = por %p3006_p13, %p3005_p12 }
  0x20   :  { %p3008_p1 = pnand %p3007_p0, %p3001_p11 }
  0x22   :  { %3011 = shalt.err (!%p3008_p1)
}
  0x23   :  { %34 = dma.hbm_to_vmem [thread:$0]  %s3216_s2, 16, %s32_s27, [#allocation6]  }
  0x24   :  { %3034 = dma.done.wait [#allocation3], 65536  }
  0x25   :  { %3035 = vsyncadd [#allocation3], 4294901760 }
  0x26   :  { %3036 = dma.done.wait [#allocation6], 16  }
  0x27   :  { %3037 = vsyncadd [#allocation6], 4294967280  ;;  %v65_v0 = vld [vmem:[#allocation2 + $0x80] sm:$0xff]  ;;  %v66_v1 = vld [vmem:[#allocation2 + $0x88] sm:$0xff]  ;;  %v3044_v47 = vmov 1983009808   ;;  %v580_v49 = vlaneseq }
  0x28   :  { %v49_v2 = vld [vmem:[#allocation2] sm:$0xff]  ;;  %v2442_v3 = vpack.c.bf16 %v66_v1, %v65_v0  ;;  %v50_v4 = vld [vmem:[#allocation2 + $0x8] sm:$0xff]  ;;  %v67_v11 = vld [vmem:[#allocation2 + $0x90] sm:$0xff]  ;;  %v578_v48 = vunpack.c.l.s4 %v3044_v47 }
  0x29   :  { %v97_v5 = vld [vmem:[#allocation2 + $0x180] sm:$0xff]  ;;  %v98_v6 = vld [vmem:[#allocation2 + $0x188] sm:$0xff]  ;;  %v2444_v7 = vpack.c.bf16 %v50_v4, %v49_v2  ;;  %v68_v13 = vld [vmem:[#allocation2 + $0x98] sm:$0xff]  ;;  %v581_v0 = vshrl.u32 %v580_v49, 7 }
  0x2a   :  { %v2474_v8 = vpack.c.bf16 %v98_v6, %v97_v5  ;;  %v81_v9 = vld [vmem:[#allocation2 + $0x100] sm:$0xff]  ;;  %v82_v10 = vld [vmem:[#allocation2 + $0x108] sm:$0xff]  ;;  %2443 = vmatprep.subr.bf16.mxu0 %v2442_v3  ;;  %v51_v14 = vld [vmem:[#allocation2 + $0x10] sm:$0xff]  ;;  %v2446_v16 = vpack.c.bf16 %v68_v13, %v67_v11  ;;  %v579_v63 = vunpack.c.0.s8 %v578_v48 }
  0x2b   :  { %v2476_v12 = vpack.c.bf16 %v82_v10, %v81_v9  ;;  %v52_v15 = vld [vmem:[#allocation2 + $0x18] sm:$0xff]  ;;  %2445 = vmatpush3.bf16.msra.mxu0 %v2444_v7  ;;  %v99_v18 = vld [vmem:[#allocation2 + $0x190] sm:$0xff]  ;;  %v69_v23 = vld [vmem:[#allocation2 + $0xa0] sm:$0xff] }
  0x2c   :  { %2475 = vmatprep.subr.bf16.mxu1 %v2474_v8  ;;  %v2448_v17 = vpack.c.bf16 %v52_v15, %v51_v14  ;;  %v100_v19 = vld [vmem:[#allocation2 + $0x198] sm:$0xff]  ;;  %v83_v20 = vld [vmem:[#allocation2 + $0x110] sm:$0xff]  ;;  %v70_v24 = vld [vmem:[#allocation2 + $0xa8] sm:$0xff]  ;;  %2447 = vmatprep.subr.bf16.mxu0 %v2446_v16  ;;  %v3090_v13 = vsub.s32 %v579_v63, %v581_v0 }
  0x2d   :  { %2477 = vmatpush3.bf16.msra.mxu1 %v2476_v12  ;;  %v2478_v21 = vpack.c.bf16 %v100_v19, %v99_v18  ;;  %v84_v22 = vld [vmem:[#allocation2 + $0x118] sm:$0xff]  ;;  %v2450_v26 = vpack.c.bf16 %v70_v24, %v69_v23  ;;  %v53_v27 = vld [vmem:[#allocation2 + $0x20] sm:$0xff]  ;;  %v54_v28 = vld [vmem:[#allocation2 + $0x28] sm:$0xff] }
  0x2e   :  { %v2480_v25 = vpack.c.bf16 %v84_v22, %v83_v20  ;;  %v101_v29 = vld [vmem:[#allocation2 + $0x1a0] sm:$0xff]  ;;  %v102_v30 = vld [vmem:[#allocation2 + $0x1a8] sm:$0xff]  ;;  %v2452_v33 = vpack.c.bf16 %v54_v28, %v53_v27  ;;  %v71_v35 = vld [vmem:[#allocation2 + $0xb0] sm:$0xff] }
  0x2f   :  { %2479 = vmatprep.subr.bf16.mxu1 %v2478_v21  ;;  %v85_v31 = vld [vmem:[#allocation2 + $0x120] sm:$0xff]  ;;  %v86_v32 = vld [vmem:[#allocation2 + $0x128] sm:$0xff]  ;;  %2449 = vmatpush3.bf16.msra.mxu0 %v2448_v17  ;;  %v2482_v34 = vpack.c.bf16 %v102_v30, %v101_v29  ;;  %v72_v36 = vld [vmem:[#allocation2 + $0xb8] sm:$0xff] }
  0x30   :  { %v55_v37 = vld [vmem:[#allocation2 + $0x30] sm:$0xff]  ;;  %2451 = vmatprep.subr.bf16.mxu0 %v2450_v26  ;;  %v2484_v38 = vpack.c.bf16 %v86_v32, %v85_v31  ;;  %v2454_v39 = vpack.c.bf16 %v72_v36, %v71_v35  ;;  %v56_v40 = vld [vmem:[#allocation2 + $0x38] sm:$0xff]  ;;  %v73_v46 = vld [vmem:[#allocation2 + $0xc0] sm:$0xff] }
  0x31   :  { %2481 = vmatpush3.bf16.msra.mxu1 %v2480_v25  ;;  %v103_v41 = vld [vmem:[#allocation2 + $0x1b0] sm:$0xff]  ;;  %v104_v42 = vld [vmem:[#allocation2 + $0x1b8] sm:$0xff]  ;;  %v74_v50 = vld [vmem:[#allocation2 + $0xc8] sm:$0xff]  ;;  %v2456_v51 = vpack.c.bf16 %v56_v40, %v55_v37 }
  0x32   :  { %2483 = vmatprep.subr.bf16.mxu1 %v2482_v34  ;;  %v2486_v43 = vpack.c.bf16 %v104_v42, %v103_v41  ;;  %v87_v44 = vld [vmem:[#allocation2 + $0x130] sm:$0xff]  ;;  %v88_v45 = vld [vmem:[#allocation2 + $0x138] sm:$0xff]  ;;  %v105_v52 = vld [vmem:[#allocation2 + $0x1c0] sm:$0xff]  ;;  %v2458_v55 = vpack.c.bf16 %v74_v50, %v73_v46 }
  0x33   :  { %2453 = vmatpush3.bf16.msra.mxu0 %v2452_v33  ;;  %v106_v53 = vld [vmem:[#allocation2 + $0x1c8] sm:$0xff]  ;;  %v2488_v54 = vpack.c.bf16 %v88_v45, %v87_v44  ;;  %v57_v56 = vld [vmem:[#allocation2 + $0x40] sm:$0xff]  ;;  %v75_v61 = vld [vmem:[#allocation2 + $0xd0] sm:$0xff] }
  0x34   :  { %2455 = vmatprep.subr.bf16.mxu0 %v2454_v39  ;;  %v58_v57 = vld [vmem:[#allocation2 + $0x48] sm:$0xff]  ;;  %v89_v58 = vld [vmem:[#allocation2 + $0x140] sm:$0xff]  ;;  %v2490_v59 = vpack.c.bf16 %v106_v53, %v105_v52  ;;  %v76_v62 = vld [vmem:[#allocation2 + $0xd8] sm:$0xff] }
  0x35   :  { %2485 = vmatpush3.bf16.msra.mxu1 %v2484_v38  ;;  %v90_v60 = vld [vmem:[#allocation2 + $0x148] sm:$0xff]  ;;  %v107_v1 = vld [vmem:[#allocation2 + $0x1d0] sm:$0xff]  ;;  %v108_v2 = vld [vmem:[#allocation2 + $0x1d8] sm:$0xff]  ;;  %v2460_v3 = vpack.c.bf16 %v58_v57, %v57_v56  ;;  %v2462_v5 = vpack.c.bf16 %v76_v62, %v75_v61 }
  0x36   :  { %2487 = vmatprep.subr.bf16.mxu1 %v2486_v43  ;;  %v2492_v4 = vpack.c.bf16 %v90_v60, %v89_v58  ;;  %v59_v6 = vld [vmem:[#allocation2 + $0x50] sm:$0xff]  ;;  %v60_v7 = vld [vmem:[#allocation2 + $0x58] sm:$0xff]  ;;  %v2494_v9 = vpack.c.bf16 %v108_v2, %v107_v1  ;;  %v77_v11 = vld [vmem:[#allocation2 + $0xe0] sm:$0xff] }
  0x37   :  { %2457 = vmatpush3.bf16.msra.mxu0 %v2456_v51  ;;  %v91_v8 = vld [vmem:[#allocation2 + $0x150] sm:$0xff]  ;;  %v92_v10 = vld [vmem:[#allocation2 + $0x158] sm:$0xff]  ;;  %v78_v12 = vld [vmem:[#allocation2 + $0xe8] sm:$0xff]  ;;  %v2464_v16 = vpack.c.bf16 %v60_v7, %v59_v6 }
  0x38   :  { %2459 = vmatprep.subr.bf16.mxu0 %v2458_v55  ;;  %v109_v14 = vld [vmem:[#allocation2 + $0x1e0] sm:$0xff]  ;;  %v110_v15 = vld [vmem:[#allocation2 + $0x1e8] sm:$0xff]  ;;  %v2496_v18 = vpack.c.bf16 %v92_v10, %v91_v8  ;;  %v2466_v19 = vpack.c.bf16 %v78_v12, %v77_v11  ;;  %v79_v25 = vld [vmem:[#allocation2 + $0xf0] sm:$0xff] }
  0x39   :  { %2489 = vmatpush3.bf16.msra.mxu1 %v2488_v54  ;;  %v61_v17 = vld [vmem:[#allocation2 + $0x60] sm:$0xff]  ;;  %v62_v20 = vld [vmem:[#allocation2 + $0x68] sm:$0xff]  ;;  %v2498_v23 = vpack.c.bf16 %v110_v15, %v109_v14  ;;  %v80_v26 = vld [vmem:[#allocation2 + $0xf8] sm:$0xff] }
  0x3a   :  { %2491 = vmatprep.subr.bf16.mxu1 %v2490_v59  ;;  %v93_v21 = vld [vmem:[#allocation2 + $0x160] sm:$0xff]  ;;  %v94_v24 = vld [vmem:[#allocation2 + $0x168] sm:$0xff]  ;;  %v111_v29 = vld [vmem:[#allocation2 + $0x1f0] sm:$0xff]  ;;  %v2468_v31 = vpack.c.bf16 %v62_v20, %v61_v17  ;;  %v2470_v35 = vpack.c.bf16 %v80_v26, %v79_v25 }
  0x3b   :  { %2461 = vmatpush3.bf16.msra.mxu0 %v2460_v3  ;;  %v41_v22 = vld [vmem:[%s3214_s0] sm:$0xff]  ;;  %v112_v30 = vld [vmem:[#allocation2 + $0x1f8] sm:$0xff]  ;;  %v2500_v34 = vpack.c.bf16 %v94_v24, %v93_v21  ;;  %v63_v36 = vld [vmem:[#allocation2 + $0x70] sm:$0xff] }
  0x3c   :  { %2463 = vmatprep.subr.bf16.mxu0 %v2462_v5  ;;  %v583_v27 = vrot.slane %v41_v22, %v3090_v13  ;;  %v576_v28 = vcombine.high %v41_v22, %v41_v22  ;;  %v64_v37 = vld [vmem:[#allocation2 + $0x78] sm:$0xff]  ;;  %v95_v38 = vld [vmem:[#allocation2 + $0x170] sm:$0xff]  ;;  %v2502_v39 = vpack.c.bf16 %v112_v30, %v111_v29  ;;  %v129_v41 = vld [vmem:[#allocation2 + $0x280] sm:$0xff] }
  0x3d   :  { %2493 = vmatpush3.bf16.msra.mxu1 %v2492_v4  ;;  %v96_v40 = vld [vmem:[#allocation2 + $0x178] sm:$0xff]  ;;  %v130_v42 = vld [vmem:[#allocation2 + $0x288] sm:$0xff]  ;;  %v161_v44 = vld [vmem:[#allocation2 + $0x380] sm:$0xff]  ;;  %v2472_v46 = vpack.c.bf16 %v64_v37, %v63_v36 }
  0x3e   :  { %2495 = vmatprep.subr.bf16.mxu1 %v2494_v9  ;;  %v591_v32 = vcombine.high %v583_v27, %v583_v27  ;;  %v590_v33 = vrot.slane %v576_v28, %v3090_v13  ;;  %v162_v45 = vld [vmem:[#allocation2 + $0x388] sm:$0xff]  ;;  %v2504_v47 = vpack.c.bf16 %v96_v40, %v95_v38  ;;  %v2506_v48 = vpack.c.bf16 %v130_v42, %v129_v41  ;;  %v113_v49 = vld [vmem:[#allocation2 + $0x200] sm:$0xff]  ;;  %v131_v54 = vld [vmem:[#allocation2 + $0x290] sm:$0xff] }
  0x3f   :  { %2465 = vmatpush3.bf16.msra.mxu0 %v2464_v16  ;;  %v114_v50 = vld [vmem:[#allocation2 + $0x208] sm:$0xff]  ;;  %v145_v51 = vld [vmem:[#allocation2 + $0x300] sm:$0xff]  ;;  %v2538_v52 = vpack.c.bf16 %v162_v45, %v161_v44  ;;  %v132_v55 = vld [vmem:[#allocation2 + $0x298] sm:$0xff] }
  0x40   :  { %2467 = vmatprep.subr.bf16.mxu0 %v2466_v19  ;;  %808 = vmatprep.mubr.f32.mxu0 %v591_v32  ;;  %v592_v43 = vcombine.high %v590_v33, %v590_v33  ;;  %v146_v53 = vld [vmem:[#allocation2 + $0x308] sm:$0xff]  ;;  %v163_v56 = vld [vmem:[#allocation2 + $0x390] sm:$0xff]  ;;  %v164_v57 = vld [vmem:[#allocation2 + $0x398] sm:$0xff]  ;;  %v2508_v58 = vpack.c.bf16 %v114_v50, %v113_v49  ;;  %v2510_v60 = vpack.c.bf16 %v132_v55, %v131_v54 }
  0x41   :  { %2497 = vmatpush3.bf16.msra.mxu1 %v2496_v18  ;;  %v2540_v59 = vpack.c.bf16 %v146_v53, %v145_v51  ;;  %v115_v61 = vld [vmem:[#allocation2 + $0x210] sm:$0xff]  ;;  %v116_v62 = vld [vmem:[#allocation2 + $0x218] sm:$0xff]  ;;  %v2542_v0 = vpack.c.bf16 %v164_v57, %v163_v56  ;;  %v133_v2 = vld [vmem:[#allocation2 + $0x2a0] sm:$0xff] }
  0x42   :  { %2499 = vmatprep.subr.bf16.mxu1 %v2498_v23  ;;  %878 = vmatprep.mubr.f32.mxu1 %v592_v43  ;;  %v147_v63 = vld [vmem:[#allocation2 + $0x310] sm:$0xff]  ;;  %v148_v1 = vld [vmem:[#allocation2 + $0x318] sm:$0xff]  ;;  %v134_v3 = vld [vmem:[#allocation2 + $0x2a8] sm:$0xff]  ;;  %v2512_v6 = vpack.c.bf16 %v116_v62, %v115_v61 }
  0x43   :  { %2469 = vmatpush3.bf16.msra.mxu0 %v2468_v31  ;;  %v165_v4 = vld [vmem:[#allocation2 + $0x3a0] sm:$0xff]  ;;  %v166_v5 = vld [vmem:[#allocation2 + $0x3a8] sm:$0xff]  ;;  %v2544_v7 = vpack.c.bf16 %v148_v1, %v147_v63  ;;  %v2514_v8 = vpack.c.bf16 %v134_v3, %v133_v2  ;;  %v135_v15 = vld [vmem:[#allocation2 + $0x2b0] sm:$0xff] }
  0x44   :  { %2471 = vmatprep.subr.bf16.mxu0 %v2470_v35  ;;  %v117_v9 = vld [vmem:[#allocation2 + $0x220] sm:$0xff]  ;;  %v118_v10 = vld [vmem:[#allocation2 + $0x228] sm:$0xff]  ;;  %v2546_v12 = vpack.c.bf16 %v166_v5, %v165_v4  ;;  %v136_v16 = vld [vmem:[#allocation2 + $0x2b8] sm:$0xff] }
  0x45   :  { %2501 = vmatpush3.bf16.msra.mxu1 %v2500_v34  ;;  %v149_v11 = vld [vmem:[#allocation2 + $0x320] sm:$0xff]  ;;  %v150_v14 = vld [vmem:[#allocation2 + $0x328] sm:$0xff]  ;;  %v167_v17 = vld [vmem:[#allocation2 + $0x3b0] sm:$0xff]  ;;  %v2516_v19 = vpack.c.bf16 %v118_v10, %v117_v9  ;;  %v2518_v21 = vpack.c.bf16 %v136_v16, %v135_v15 }
  0x46   :  { %2503 = vmatprep.subr.bf16.mxu1 %v2502_v39  ;;  %v168_v18 = vld [vmem:[#allocation2 + $0x3b8] sm:$0xff]  ;;  %v2548_v20 = vpack.c.bf16 %v150_v14, %v149_v11  ;;  %v119_v22 = vld [vmem:[#allocation2 + $0x230] sm:$0xff]  ;;  %v138_v28 = vld [vmem:[#allocation2 + $0x2c8] sm:$0xff] }
  0x47   :  { %2473 = vmatpush3.bf16.msra.mxu0 %v2472_v46  ;;  %v120_v23 = vld [vmem:[#allocation2 + $0x238] sm:$0xff]  ;;  %v151_v24 = vld [vmem:[#allocation2 + $0x330] sm:$0xff]  ;;  %v2550_v25 = vpack.c.bf16 %v168_v18, %v167_v17  ;;  %v169_v29 = vld [vmem:[#allocation2 + $0x3c0] sm:$0xff] }
  0x48   :  { %2507 = vmatprep.subr.bf16.mxu0 %v2506_v48  ;;  %v152_v26 = vld [vmem:[#allocation2 + $0x338] sm:$0xff]  ;;  %v170_v30 = vld [vmem:[#allocation2 + $0x3c8] sm:$0xff]  ;;  %v2520_v32 = vpack.c.bf16 %v120_v23, %v119_v22  ;;  %v121_v37 = vld [vmem:[#allocation2 + $0x240] sm:$0xff] }
  0x49   :  { %2505 = vmatpush3.bf16.msra.mxu1 %v2504_v47  ;;  %v42_v31 = vld [vmem:[%s3214_s0 + $0x8] sm:$0xff]  ;;  %v2552_v35 = vpack.c.bf16 %v152_v26, %v151_v24  ;;  %v153_v39 = vld [vmem:[#allocation2 + $0x340] sm:$0xff]  ;;  %v2554_v40 = vpack.c.bf16 %v170_v30, %v169_v29  ;;  %v139_v42 = vld [vmem:[#allocation2 + $0x2d0] sm:$0xff] }
  0x4a   :  { %2539 = vmatprep.subr.bf16.mxu1 %v2538_v52  ;;  %809 = vmatmul.mubr.f32.vlgmr.msra.gmra.mrb[0].mxu0 %v583_v27  ;;  %v137_v27 = vld [vmem:[#allocation2 + $0x2c0] sm:$0xff]  ;;  %v593_v34 = vcombine.high %v42_v31, %v42_v31  ;;  %v122_v38 = vld [vmem:[#allocation2 + $0x248] sm:$0xff]  ;;  %v140_v43 = vld [vmem:[#allocation2 + $0x2d8] sm:$0xff] }
  0x4b   :  { %2509 = vmatpush3.bf16.msra.mxu0 %v2508_v58  ;;  %v2522_v36 = vpack.c.bf16 %v138_v28, %v137_v27  ;;  %v154_v41 = vld [vmem:[#allocation2 + $0x348] sm:$0xff]  ;;  %v171_v46 = vld [vmem:[#allocation2 + $0x3d0] sm:$0xff]  ;;  %v172_v47 = vld [vmem:[#allocation2 + $0x3d8] sm:$0xff]  ;;  %v2524_v48 = vpack.c.bf16 %v122_v38, %v121_v37  ;;  %v2526_v51 = vpack.c.bf16 %v140_v43, %v139_v42 }
  0x4c   :  { %879 = vmatmul.mubr.f32.vlgmr.msra.gmra.mrb[0].mxu1 %v590_v33  ;;  %2511 = vmatprep.subr.bf16.mxu0 %v2510_v60  ;;  %v3101_v33 = vrot.slane %v42_v31, %v3090_v13  ;;  %v3106_v45 = vrot.slane %v593_v34, %v3090_v13  ;;  %v2556_v50 = vpack.c.bf16 %v154_v41, %v153_v39  ;;  %v123_v52 = vld [vmem:[#allocation2 + $0x250] sm:$0xff]  ;;  %v124_v53 = vld [vmem:[#allocation2 + $0x258] sm:$0xff]  ;;  %v141_v57 = vld [vmem:[#allocation2 + $0x2e0] sm:$0xff] }
  0x4d   :  { %2541 = vmatpush3.bf16.msra.mxu1 %v2540_v59  ;;  %v155_v54 = vld [vmem:[#allocation2 + $0x350] sm:$0xff]  ;;  %v2558_v55 = vpack.c.bf16 %v172_v47, %v171_v46  ;;  %v156_v56 = vld [vmem:[#allocation2 + $0x358] sm:$0xff]  ;;  %v142_v58 = vld [vmem:[#allocation2 + $0x2e8] sm:$0xff]  ;;  %v2528_v61 = vpack.c.bf16 %v124_v53, %v123_v52 }
  0x4e   :  { %2543 = vmatprep.subr.bf16.mxu1 %v2542_v0  ;;  %v608_v44 = vcombine.high %v3101_v33, %v3101_v33  ;;  %v609_v49 = vcombine.high %v3106_v45, %v3106_v45  ;;  %v173_v59 = vld [vmem:[#allocation2 + $0x3e0] sm:$0xff]  ;;  %v174_v60 = vld [vmem:[#allocation2 + $0x3e8] sm:$0xff]  ;;  %v2560_v62 = vpack.c.bf16 %v156_v56, %v155_v54  ;;  %v2530_v63 = vpack.c.bf16 %v142_v58, %v141_v57  ;;  %v143_v5 = vld [vmem:[#allocation2 + $0x2f0] sm:$0xff] }
  0x4f   :  { %2513 = vmatpush3.bf16.msra.mxu0 %v2512_v6  ;;  %v125_v0 = vld [vmem:[#allocation2 + $0x260] sm:$0xff]  ;;  %v126_v1 = vld [vmem:[#allocation2 + $0x268] sm:$0xff]  ;;  %v2562_v3 = vpack.c.bf16 %v174_v60, %v173_v59  ;;  %v144_v6 = vld [vmem:[#allocation2 + $0x2f8] sm:$0xff] }
  0x50   :  { %2515 = vmatprep.subr.bf16.mxu0 %v2514_v8  ;;  %948 = vmatprep.mubr.f32.mxu0 %v608_v44  ;;  %v157_v2 = vld [vmem:[#allocation2 + $0x360] sm:$0xff]  ;;  %v158_v4 = vld [vmem:[#allocation2 + $0x368] sm:$0xff]  ;;  %v176_v8 = vld [vmem:[#allocation2 + $0x3f8] sm:$0xff]  ;;  %v2532_v9 = vpack.c.bf16 %v126_v1, %v125_v0  ;;  %v2534_v11 = vpack.c.bf16 %v144_v6, %v143_v5 }
  0x51   :  { %2545 = vmatpush3.bf16.msra.mxu1 %v2544_v7  ;;  %1018 = vmatprep.mubr.f32.mxu1 %v609_v49  ;;  %v175_v7 = vld [vmem:[#allocation2 + $0x3f0] sm:$0xff]  ;;  %v2564_v10 = vpack.c.bf16 %v158_v4, %v157_v2  ;;  %v128_v14 = vld [vmem:[#allocation2 + $0x278] sm:$0xff]  ;;  %v193_v18 = vld [vmem:[#allocation2 + $0x480] sm:$0xff] }
  0x52   :  { %2547 = vmatprep.subr.bf16.mxu1 %v2546_v12  ;;  %v127_v12 = vld [vmem:[#allocation2 + $0x270] sm:$0xff]  ;;  %v2566_v16 = vpack.c.bf16 %v176_v8, %v175_v7  ;;  %v160_v17 = vld [vmem:[#allocation2 + $0x378] sm:$0xff]  ;;  %v177_v23 = vld [vmem:[#allocation2 + $0x400] sm:$0xff] }
  0x53   :  { %2517 = vmatpush3.bf16.msra.mxu0 %v2516_v19  ;;  %v159_v15 = vld [vmem:[#allocation2 + $0x370] sm:$0xff]  ;;  %v194_v19 = vld [vmem:[#allocation2 + $0x488] sm:$0xff]  ;;  %v2536_v22 = vpack.c.bf16 %v128_v14, %v127_v12  ;;  %v209_v27 = vld [vmem:[#allocation2 + $0x500] sm:$0xff] }
  0x54   :  { %2519 = vmatprep.subr.bf16.mxu0 %v2518_v21  ;;  %v226_v21 = vld [vmem:[#allocation2 + $0x588] sm:$0xff]  ;;  %v2568_v24 = vpack.c.bf16 %v160_v17, %v159_v15  ;;  %v195_v30 = vld [vmem:[#allocation2 + $0x490] sm:$0xff]  ;;  %v196_v31 = vld [vmem:[#allocation2 + $0x498] sm:$0xff] }
  0x55   :  { %2549 = vmatpush3.bf16.msra.mxu1 %v2548_v20  ;;  %v225_v20 = vld [vmem:[#allocation2 + $0x580] sm:$0xff]  ;;  %v178_v26 = vld [vmem:[#allocation2 + $0x408] sm:$0xff]  ;;  %v228_v34 = vld [vmem:[#allocation2 + $0x598] sm:$0xff]  ;;  %v2574_v38 = vpack.c.bf16 %v196_v31, %v195_v30 }
  0x56   :  { %2551 = vmatprep.subr.bf16.mxu1 %v2550_v25  ;;  %v2570_v25 = vpack.c.bf16 %v194_v19, %v193_v18  ;;  %v210_v28 = vld [vmem:[#allocation2 + $0x508] sm:$0xff]  ;;  %v2602_v29 = vpack.c.bf16 %v226_v21, %v225_v20  ;;  %v43_v37 = vld [vmem:[%s3214_s0 + $0x10] sm:$0xff]  ;;  %v212_v46 = vld [vmem:[#allocation2 + $0x518] sm:$0xff] }
  0x57   :  { %2521 = vmatpush3.bf16.msra.mxu0 %v2520_v32  ;;  %v227_v32 = vld [vmem:[#allocation2 + $0x590] sm:$0xff]  ;;  %v3114_v42 = vrot.slane %v43_v37, %v3090_v13  ;;  %v610_v43 = vcombine.high %v43_v37, %v43_v37  ;;  %v197_v47 = vld [vmem:[#allocation2 + $0x4a0] sm:$0xff]  ;;  %v182_v57 = vld [vmem:[#allocation2 + $0x428] sm:$0xff] }
  0x58   :  { %2523 = vmatprep.subr.bf16.mxu0 %v2522_v36  ;;  %v2604_v36 = vpack.c.bf16 %v210_v28, %v209_v27  ;;  %v179_v39 = vld [vmem:[#allocation2 + $0x410] sm:$0xff]  ;;  %v2606_v44 = vpack.c.bf16 %v228_v34, %v227_v32  ;;  %v229_v49 = vld [vmem:[#allocation2 + $0x5a0] sm:$0xff]  ;;  %v214_v60 = vld [vmem:[#allocation2 + $0x528] sm:$0xff] }
  0x59   :  { %2553 = vmatpush3.bf16.msra.mxu1 %v2552_v35  ;;  %v2572_v35 = vpack.c.bf16 %v178_v26, %v177_v23  ;;  %v211_v41 = vld [vmem:[#allocation2 + $0x510] sm:$0xff]  ;;  %v3120_v52 = vrot.slane %v610_v43, %v3090_v13  ;;  %v181_v56 = vld [vmem:[#allocation2 + $0x420] sm:$0xff]  ;;  %v232_v0 = vld [vmem:[#allocation2 + $0x5b8] sm:$0xff] }
  0x5a   :  { %2555 = vmatprep.subr.bf16.mxu1 %v2554_v40  ;;  %v180_v40 = vld [vmem:[#allocation2 + $0x418] sm:$0xff]  ;;  %v2608_v54 = vpack.c.bf16 %v212_v46, %v211_v41  ;;  %v213_v58 = vld [vmem:[#allocation2 + $0x520] sm:$0xff]  ;;  %v215_v5 = vld [vmem:[#allocation2 + $0x530] sm:$0xff] }
  0x5b   :  { %2525 = vmatpush3.bf16.msra.mxu0 %v2524_v48  ;;  %v198_v48 = vld [vmem:[#allocation2 + $0x4a8] sm:$0xff]  ;;  %v2576_v53 = vpack.c.bf16 %v180_v40, %v179_v39  ;;  %v2612_v1 = vpack.c.bf16 %v214_v60, %v213_v58  ;;  %v184_v4 = vld [vmem:[#allocation2 + $0x438] sm:$0xff]  ;;  %v201_v8 = vld [vmem:[#allocation2 + $0x4c0] sm:$0xff] }
  0x5c   :  { %2527 = vmatprep.subr.bf16.mxu0 %v2526_v51  ;;  %v625_v51 = vcombine.high %v3114_v42, %v3114_v42  ;;  %v216_v7 = vld [vmem:[#allocation2 + $0x538] sm:$0xff]  ;;  %v186_v17 = vld [vmem:[#allocation2 + $0x448] sm:$0xff]  ;;  %v217_v18 = vld [vmem:[#allocation2 + $0x540] sm:$0xff] }
  0x5d   :  { %2557 = vmatpush3.bf16.msra.mxu1 %v2556_v50  ;;  %v230_v50 = vld [vmem:[#allocation2 + $0x5a8] sm:$0xff]  ;;  %v2616_v14 = vpack.c.bf16 %v216_v7, %v215_v5  ;;  %v203_v21 = vld [vmem:[#allocation2 + $0x4d0] sm:$0xff]  ;;  %v220_v32 = vld [vmem:[#allocation2 + $0x558] sm:$0xff] }
  0x5e   :  { %2559 = vmatprep.subr.bf16.mxu1 %v2558_v55  ;;  %v2578_v55 = vpack.c.bf16 %v198_v48, %v197_v47  ;;  %v2610_v59 = vpack.c.bf16 %v230_v50, %v229_v49  ;;  %v218_v20 = vld [vmem:[#allocation2 + $0x548] sm:$0xff]  ;;  %v235_v23 = vld [vmem:[#allocation2 + $0x5d0] sm:$0xff]  ;;  %v205_v34 = vld [vmem:[#allocation2 + $0x4e0] sm:$0xff] }
  0x5f   :  { %2529 = vmatpush3.bf16.msra.mxu0 %v2528_v61  ;;  %v199_v61 = vld [vmem:[#allocation2 + $0x4b0] sm:$0xff]  ;;  %v2620_v26 = vpack.c.bf16 %v218_v20, %v217_v18  ;;  %v238_v37 = vld [vmem:[#allocation2 + $0x5e8] sm:$0xff]  ;;  %v189_v41 = vld [vmem:[#allocation2 + $0x460] sm:$0xff] }
  0x60   :  { %2531 = vmatprep.subr.bf16.mxu0 %v2530_v63  ;;  %v231_v63 = vld [vmem:[#allocation2 + $0x5b0] sm:$0xff]  ;;  %v190_v43 = vld [vmem:[#allocation2 + $0x468] sm:$0xff]  ;;  %v208_v49 = vld [vmem:[#allocation2 + $0x4f8] sm:$0xff] }
  0x61   :  { %2561 = vmatpush3.bf16.msra.mxu1 %v2560_v62  ;;  %v200_v62 = vld [vmem:[#allocation2 + $0x4b8] sm:$0xff]  ;;  %v2614_v6 = vpack.c.bf16 %v232_v0, %v231_v63  ;;  %v187_v28 = vld [vmem:[#allocation2 + $0x450] sm:$0xff]  ;;  %v222_v47 = vld [vmem:[#allocation2 + $0x568] sm:$0xff] }
  0x62   :  { %2563 = vmatprep.subr.bf16.mxu1 %v2562_v3  ;;  %v2582_v2 = vpack.c.bf16 %v200_v62, %v199_v61  ;;  %v183_v3 = vld [vmem:[#allocation2 + $0x430] sm:$0xff]  ;;  %v192_v58 = vld [vmem:[#allocation2 + $0x478] sm:$0xff]  ;;  %v257_v61 = vld [vmem:[#allocation2 + $0x680] sm:$0xff] }
  0x63   :  { %2533 = vmatpush3.bf16.msra.mxu0 %v2532_v9  ;;  %v202_v9 = vld [vmem:[#allocation2 + $0x4c8] sm:$0xff]  ;;  %v2584_v12 = vpack.c.bf16 %v184_v4, %v183_v3  ;;  %v219_v30 = vld [vmem:[#allocation2 + $0x550] sm:$0xff]  ;;  %v224_v60 = vld [vmem:[#allocation2 + $0x578] sm:$0xff] }
  0x64   :  { %2535 = vmatprep.subr.bf16.mxu0 %v2534_v11  ;;  %v234_v11 = vld [vmem:[#allocation2 + $0x5c8] sm:$0xff]  ;;  %v2586_v15 = vpack.c.bf16 %v202_v9, %v201_v8  ;;  %v2624_v39 = vpack.c.bf16 %v220_v32, %v219_v30  ;;  %v207_v48 = vld [vmem:[#allocation2 + $0x4f0] sm:$0xff]  ;;  %v289_v63 = vld [vmem:[#allocation2 + $0x780] sm:$0xff] }
  0x65   :  { %2565 = vmatpush3.bf16.msra.mxu1 %v2564_v10  ;;  %v233_v10 = vld [vmem:[#allocation2 + $0x5c0] sm:$0xff]  ;;  %v239_v50 = vld [vmem:[#allocation2 + $0x5f0] sm:$0xff]  ;;  %v258_v62 = vld [vmem:[#allocation2 + $0x688] sm:$0xff] }
  0x66   :  { %2567 = vmatprep.subr.bf16.mxu1 %v2566_v16  ;;  %v185_v16 = vld [vmem:[#allocation2 + $0x440] sm:$0xff]  ;;  %v2618_v19 = vpack.c.bf16 %v234_v11, %v233_v10  ;;  %v290_v0 = vld [vmem:[#allocation2 + $0x788] sm:$0xff]  ;;  %v2634_v3 = vpack.c.bf16 %v258_v62, %v257_v61  ;;  %v259_v9 = vld [vmem:[#allocation2 + $0x690] sm:$0xff] }
  0x67   :  { %2537 = vmatpush3.bf16.msra.mxu0 %v2536_v22  ;;  %v204_v22 = vld [vmem:[#allocation2 + $0x4d8] sm:$0xff]  ;;  %v241_v4 = vld [vmem:[#allocation2 + $0x600] sm:$0xff]  ;;  %v242_v5 = vld [vmem:[#allocation2 + $0x608] sm:$0xff]  ;;  %v2666_v7 = vpack.c.bf16 %v290_v0, %v289_v63 }
  0x68   :  { %2571 = vmatprep.subr.bf16.mxu0 %v2570_v25  ;;  %v2588_v25 = vpack.c.bf16 %v186_v17, %v185_v16  ;;  %v2590_v27 = vpack.c.bf16 %v204_v22, %v203_v21  ;;  %v274_v8 = vld [vmem:[#allocation2 + $0x708] sm:$0xff]  ;;  %v260_v10 = vld [vmem:[#allocation2 + $0x698] sm:$0xff]  ;;  %v2636_v16 = vpack.c.bf16 %v242_v5, %v241_v4  ;;  %v275_v21 = vld [vmem:[#allocation2 + $0x710] sm:$0xff] }
  0x69   :  { %2569 = vmatpush3.bf16.msra.mxu1 %v2568_v24  ;;  %v236_v24 = vld [vmem:[#allocation2 + $0x5d8] sm:$0xff]  ;;  %v2638_v18 = vpack.c.bf16 %v260_v10, %v259_v9  ;;  %v282_v62 = vld [vmem:[#allocation2 + $0x748] sm:$0xff]  ;;  %v267_v63 = vld [vmem:[#allocation2 + $0x6d0] sm:$0xff] }
  0x6a   :  { %2603 = vmatprep.subr.bf16.mxu1 %v2602_v29  ;;  %949 = vmatmul.mubr.f32.vlgmr.msra.gmra.mrb[2].mxu0 %v3101_v33  ;;  %v626_v33 = vcombine.high %v3120_v52, %v3120_v52  ;;  %v188_v29 = vld [vmem:[#allocation2 + $0x458] sm:$0xff]  ;;  %v2622_v31 = vpack.c.bf16 %v236_v24, %v235_v23  ;;  %v261_v24 = vld [vmem:[#allocation2 + $0x6a0] sm:$0xff]  ;;  %v251_v5 = vld [vmem:[#allocation2 + $0x650] sm:$0xff] }
  0x6b   :  { %2573 = vmatpush3.bf16.msra.mxu0 %v2572_v35  ;;  %1088 = vmatprep.mubr.f32.mxu0 %v625_v51  ;;  %v206_v35 = vld [vmem:[#allocation2 + $0x4e8] sm:$0xff]  ;;  %v240_v51 = vld [vmem:[#allocation2 + $0x5f8] sm:$0xff]  ;;  %v269_v10 = vld [vmem:[#allocation2 + $0x6e0] sm:$0xff] }
  0x6c   :  { %1019 = vmatmul.mubr.f32.vlgmr.msra.gmra.mrb[2].mxu1 %v3106_v45  ;;  %2575 = vmatprep.subr.bf16.mxu0 %v2574_v38  ;;  %v2580_v45 = vpack.c.bf16 %v182_v57, %v181_v56  ;;  %v2592_v38 = vpack.c.bf16 %v188_v29, %v187_v28  ;;  %v2594_v40 = vpack.c.bf16 %v206_v35, %v205_v34  ;;  %v191_v57 = vld [vmem:[#allocation2 + $0x470] sm:$0xff]  ;;  %v244_v20 = vld [vmem:[#allocation2 + $0x618] sm:$0xff]  ;;  %v294_v28 = vld [vmem:[#allocation2 + $0x7a8] sm:$0xff] }
  0x6d   :  { %2605 = vmatpush3.bf16.msra.mxu1 %v2604_v36  ;;  %1158 = vmatprep.mubr.f32.mxu1 %v626_v33  ;;  %v237_v36 = vld [vmem:[#allocation2 + $0x5e0] sm:$0xff]  ;;  %v2598_v56 = vpack.c.bf16 %v208_v49, %v207_v48  ;;  %v223_v33 = vld [vmem:[#allocation2 + $0x570] sm:$0xff]  ;;  %v276_v23 = vld [vmem:[#allocation2 + $0x718] sm:$0xff] }
  0x6e   :  { %2607 = vmatprep.subr.bf16.mxu1 %v2606_v44  ;;  %v221_v44 = vld [vmem:[#allocation2 + $0x560] sm:$0xff]  ;;  %v2626_v46 = vpack.c.bf16 %v238_v37, %v237_v36  ;;  %v246_v35 = vld [vmem:[#allocation2 + $0x628] sm:$0xff]  ;;  %v279_v48 = vld [vmem:[#allocation2 + $0x730] sm:$0xff] }
  0x6f   :  { %2577 = vmatpush3.bf16.msra.mxu0 %v2576_v53  ;;  %v2596_v53 = vpack.c.bf16 %v190_v43, %v189_v41  ;;  %v245_v34 = vld [vmem:[#allocation2 + $0x620] sm:$0xff]  ;;  %v296_v41 = vld [vmem:[#allocation2 + $0x7b8] sm:$0xff] }
  0x70   :  { %2579 = vmatprep.subr.bf16.mxu0 %v2578_v55  ;;  %v2628_v55 = vpack.c.bf16 %v222_v47, %v221_v44  ;;  %v277_v36 = vld [vmem:[#allocation2 + $0x720] sm:$0xff]  ;;  %v2644_v43 = vpack.c.bf16 %v246_v35, %v245_v34  ;;  %v248_v47 = vld [vmem:[#allocation2 + $0x638] sm:$0xff]  ;;  %v255_v34 = vld [vmem:[#allocation2 + $0x670] sm:$0xff] }
  0x71   :  { %2609 = vmatpush3.bf16.msra.mxu1 %v2608_v54  ;;  %v44_v54 = vld [vmem:[%s3214_s0 + $0x18] sm:$0xff] }
  0x72   :  { %2611 = vmatprep.subr.bf16.mxu1 %v2610_v59  ;;  %v2630_v59 = vpack.c.bf16 %v240_v51, %v239_v50  ;;  %v3129_v11 = vrot.slane %v44_v54, %v3090_v13  ;;  %v280_v50 = vld [vmem:[#allocation2 + $0x738] sm:$0xff]  ;;  %v265_v51 = vld [vmem:[#allocation2 + $0x6c0] sm:$0xff] }
  0x73   :  { %2581 = vmatpush3.bf16.msra.mxu0 %v2580_v45  ;;  %v627_v45 = vcombine.high %v44_v54, %v44_v54  ;;  %v297_v54 = vld [vmem:[#allocation2 + $0x7c0] sm:$0xff]  ;;  %v268_v0 = vld [vmem:[#allocation2 + $0x6d8] sm:$0xff] }
  0x74   :  { %2583 = vmatprep.subr.bf16.mxu0 %v2582_v2  ;;  %v2632_v2 = vpack.c.bf16 %v224_v60, %v223_v33  ;;  %v249_v33 = vld [vmem:[#allocation2 + $0x640] sm:$0xff]  ;;  %v2654_v4 = vpack.c.bf16 %v268_v0, %v267_v63  ;;  %v284_v9 = vld [vmem:[#allocation2 + $0x758] sm:$0xff]  ;;  %v339_v63 = vld [vmem:[#allocation2 + $0x910] sm:$0xff] }
  0x75   :  { %2613 = vmatpush3.bf16.msra.mxu1 %v2612_v1  ;;  %v2600_v1 = vpack.c.bf16 %v192_v58, %v191_v57  ;;  %v2680_v57 = vpack.c.bf16 %v280_v50, %v279_v48  ;;  %v281_v60 = vld [vmem:[#allocation2 + $0x740] sm:$0xff]  ;;  %v256_v35 = vld [vmem:[#allocation2 + $0x678] sm:$0xff]  ;;  %v306_v48 = vld [vmem:[#allocation2 + $0x808] sm:$0xff] }
  0x76   :  { %2615 = vmatprep.subr.bf16.mxu1 %v2614_v6  ;;  %v273_v6 = vld [vmem:[#allocation2 + $0x700] sm:$0xff] }
  0x77   :  { %2585 = vmatpush3.bf16.msra.mxu0 %v2584_v12  ;;  %v291_v12 = vld [vmem:[#allocation2 + $0x790] sm:$0xff]  ;;  %v2668_v17 = vpack.c.bf16 %v274_v8, %v273_v6  ;;  %v252_v6 = vld [vmem:[#allocation2 + $0x658] sm:$0xff] }
  0x78   :  { %2587 = vmatprep.subr.bf16.mxu0 %v2586_v15  ;;  %v3132_v15 = vrot.slane %v627_v45, %v3090_v13  ;;  %v299_v45 = vld [vmem:[#allocation2 + $0x7d0] sm:$0xff] }
  0x79   :  { %2617 = vmatpush3.bf16.msra.mxu1 %v2616_v14  ;;  %v292_v14 = vld [vmem:[#allocation2 + $0x798] sm:$0xff] }
  0x7a   :  { %2619 = vmatprep.subr.bf16.mxu1 %v2618_v19  ;;  %v243_v19 = vld [vmem:[#allocation2 + $0x610] sm:$0xff]  ;;  %v2670_v22 = vpack.c.bf16 %v292_v14, %v291_v12  ;;  %v643_v29 = vcombine.high %v3132_v15, %v3132_v15  ;;  %v270_v12 = vld [vmem:[#allocation2 + $0x6e8] sm:$0xff]  ;;  %v301_v14 = vld [vmem:[#allocation2 + $0x7e0] sm:$0xff] }
  0x7b   :  { %2589 = vmatpush3.bf16.msra.mxu0 %v2588_v25  ;;  %v262_v25 = vld [vmem:[#allocation2 + $0x6a8] sm:$0xff]  ;;  %v2640_v30 = vpack.c.bf16 %v244_v20, %v243_v19  ;;  %v2658_v19 = vpack.c.bf16 %v270_v12, %v269_v10  ;;  %v253_v20 = vld [vmem:[#allocation2 + $0x660] sm:$0xff] }
  0x7c   :  { %2591 = vmatprep.subr.bf16.mxu0 %v2590_v27  ;;  %v293_v27 = vld [vmem:[#allocation2 + $0x7a0] sm:$0xff]  ;;  %v2642_v32 = vpack.c.bf16 %v262_v25, %v261_v24  ;;  %v286_v24 = vld [vmem:[#allocation2 + $0x768] sm:$0xff]  ;;  %v271_v25 = vld [vmem:[#allocation2 + $0x6f0] sm:$0xff] }
  0x7d   :  { %2621 = vmatpush3.bf16.msra.mxu1 %v2620_v26  ;;  %v642_v26 = vcombine.high %v3129_v11, %v3129_v11  ;;  %v2674_v37 = vpack.c.bf16 %v294_v28, %v293_v27  ;;  %v303_v27 = vld [vmem:[#allocation2 + $0x7f0] sm:$0xff]  ;;  %v304_v28 = vld [vmem:[#allocation2 + $0x7f8] sm:$0xff]  ;;  %v309_v10 = vld [vmem:[#allocation2 + $0x820] sm:$0xff] }
  0x7e   :  { %2623 = vmatprep.subr.bf16.mxu1 %v2622_v31  ;;  %v2672_v31 = vpack.c.bf16 %v276_v23, %v275_v21  ;;  %v254_v21 = vld [vmem:[#allocation2 + $0x668] sm:$0xff] }
  0x7f   :  { %2593 = vmatpush3.bf16.msra.mxu0 %v2592_v38  ;;  %v278_v38 = vld [vmem:[#allocation2 + $0x728] sm:$0xff] }
  0x80   :  { %2595 = vmatprep.subr.bf16.mxu0 %v2594_v40  ;;  %v295_v40 = vld [vmem:[#allocation2 + $0x7b0] sm:$0xff]  ;;  %v310_v12 = vld [vmem:[#allocation2 + $0x828] sm:$0xff] }
  0x81   :  { %2625 = vmatpush3.bf16.msra.mxu1 %v2624_v39  ;;  %v264_v39 = vld [vmem:[#allocation2 + $0x6b8] sm:$0xff]  ;;  %v2678_v49 = vpack.c.bf16 %v296_v41, %v295_v40  ;;  %v353_v40 = vld [vmem:[#allocation2 + $0x980] sm:$0xff]  ;;  %v354_v41 = vld [vmem:[#allocation2 + $0x988] sm:$0xff] }
  0x82   :  { %2627 = vmatprep.subr.bf16.mxu1 %v2626_v46  ;;  %v247_v46 = vld [vmem:[#allocation2 + $0x630] sm:$0xff]  ;;  %v2730_v50 = vpack.c.bf16 %v354_v41, %v353_v40  ;;  %v332_v41 = vld [vmem:[#allocation2 + $0x8d8] sm:$0xff] }
  0x83   :  { %2597 = vmatpush3.bf16.msra.mxu0 %v2596_v53  ;;  %v266_v53 = vld [vmem:[#allocation2 + $0x6c8] sm:$0xff]  ;;  %v331_v40 = vld [vmem:[#allocation2 + $0x8d0] sm:$0xff] }
  0x84   :  { %2599 = vmatprep.subr.bf16.mxu0 %v2598_v56  ;;  %v2648_v56 = vpack.c.bf16 %v248_v47, %v247_v46  ;;  %v2650_v58 = vpack.c.bf16 %v266_v53, %v265_v51  ;;  %v305_v47 = vld [vmem:[#allocation2 + $0x800] sm:$0xff]  ;;  %v338_v51 = vld [vmem:[#allocation2 + $0x908] sm:$0xff]  ;;  %v323_v53 = vld [vmem:[#allocation2 + $0x890] sm:$0xff] }
  0x85   :  { %2629 = vmatpush3.bf16.msra.mxu1 %v2628_v55  ;;  %v298_v55 = vld [vmem:[#allocation2 + $0x7c8] sm:$0xff] }
  0x86   :  { %2631 = vmatprep.subr.bf16.mxu1 %v2630_v59  ;;  %v250_v59 = vld [vmem:[#allocation2 + $0x648] sm:$0xff]  ;;  %v2682_v61 = vpack.c.bf16 %v298_v55, %v297_v54  ;;  %v324_v54 = vld [vmem:[#allocation2 + $0x898] sm:$0xff] }
  0x87   :  { %2601 = vmatpush3.bf16.msra.mxu0 %v2600_v1  ;;  %v300_v1 = vld [vmem:[#allocation2 + $0x7d8] sm:$0xff] }
  0x88   :  { %2635 = vmatprep.subr.bf16.mxu0 %v2634_v3  ;;  %v2684_v3 = vpack.c.bf16 %v282_v62, %v281_v60  ;;  %v2686_v8 = vpack.c.bf16 %v300_v1, %v299_v45  ;;  %v2702_v60 = vpack.c.bf16 %v324_v54, %v323_v53  ;;  %v308_v62 = vld [vmem:[#allocation2 + $0x818] sm:$0xff]  ;;  %v325_v1 = vld [vmem:[#allocation2 + $0x8a0] sm:$0xff] }
  0x89   :  { %2633 = vmatpush3.bf16.msra.mxu1 %v2632_v2  ;;  %v2652_v2 = vpack.c.bf16 %v250_v59, %v249_v33  ;;  %v2700_v33 = vpack.c.bf16 %v306_v48, %v305_v47  ;;  %v340_v45 = vld [vmem:[#allocation2 + $0x918] sm:$0xff]  ;;  %v2718_v47 = vpack.c.bf16 %v332_v41, %v331_v40  ;;  %v315_v48 = vld [vmem:[#allocation2 + $0x850] sm:$0xff]  ;;  %v333_v54 = vld [vmem:[#allocation2 + $0x8e0] sm:$0xff] }
  0x8a   :  { %2667 = vmatprep.subr.bf16.mxu1 %v2666_v7  ;;  %1089 = vmatmul.mubr.f32.vlgmr.msra.gmra.mrb[4].mxu0 %v3114_v42  ;;  %v263_v42 = vld [vmem:[#allocation2 + $0x6b0] sm:$0xff]  ;;  %v348_v53 = vld [vmem:[#allocation2 + $0x958] sm:$0xff] }
  0x8b   :  { %2637 = vmatpush3.bf16.msra.mxu0 %v2636_v16  ;;  %1228 = vmatprep.mubr.f32.mxu0 %v642_v26  ;;  %v2646_v44 = vpack.c.bf16 %v264_v39, %v263_v42  ;;  %v283_v7 = vld [vmem:[#allocation2 + $0x750] sm:$0xff]  ;;  %v302_v16 = vld [vmem:[#allocation2 + $0x7e8] sm:$0xff]  ;;  %v272_v26 = vld [vmem:[#allocation2 + $0x6f8] sm:$0xff] }
  0x8c   :  { %1159 = vmatmul.mubr.f32.vlgmr.msra.gmra.mrb[4].mxu1 %v3120_v52  ;;  %2639 = vmatprep.subr.bf16.mxu0 %v2638_v18  ;;  %v2676_v52 = vpack.c.bf16 %v278_v38, %v277_v36  ;;  %v2688_v18 = vpack.c.bf16 %v284_v9, %v283_v7  ;;  %v2690_v23 = vpack.c.bf16 %v302_v16, %v301_v14  ;;  %v287_v36 = vld [vmem:[#allocation2 + $0x770] sm:$0xff]  ;;  %v288_v38 = vld [vmem:[#allocation2 + $0x778] sm:$0xff]  ;;  %v321_v42 = vld [vmem:[#allocation2 + $0x880] sm:$0xff] }
  0x8d   :  { %2669 = vmatpush3.bf16.msra.mxu1 %v2668_v17  ;;  %1298 = vmatprep.mubr.f32.mxu1 %v643_v29  ;;  %v2656_v17 = vpack.c.bf16 %v252_v6, %v251_v5  ;;  %v2660_v29 = vpack.c.bf16 %v254_v21, %v253_v20  ;;  %v322_v39 = vld [vmem:[#allocation2 + $0x888] sm:$0xff]  ;;  %v341_v14 = vld [vmem:[#allocation2 + $0x920] sm:$0xff]  ;;  %v360_v20 = vld [vmem:[#allocation2 + $0x9b8] sm:$0xff]  ;;  %v2708_v21 = vpack.c.bf16 %v310_v12, %v309_v10 }
  0x8e   :  { %2671 = vmatprep.subr.bf16.mxu1 %v2670_v22  ;;  %v285_v22 = vld [vmem:[#allocation2 + $0x760] sm:$0xff]  ;;  %v2698_v46 = vpack.c.bf16 %v322_v39, %v321_v42  ;;  %v358_v5 = vld [vmem:[#allocation2 + $0x9a8] sm:$0xff]  ;;  %v319_v10 = vld [vmem:[#allocation2 + $0x870] sm:$0xff] }
  0x8f   :  { %2641 = vmatpush3.bf16.msra.mxu0 %v2640_v30  ;;  %v45_v30 = vld [vmem:[%s3214_s0 + $0x20] sm:$0xff]  ;;  %v346_v39 = vld [vmem:[#allocation2 + $0x948] sm:$0xff]  ;;  %v320_v12 = vld [vmem:[#allocation2 + $0x878] sm:$0xff] }
  0x90   :  { %2643 = vmatprep.subr.bf16.mxu0 %v2642_v32  ;;  %v2662_v32 = vpack.c.bf16 %v272_v26, %v271_v25  ;;  %v3144_v55 = vrot.slane %v45_v30, %v3090_v13  ;;  %v343_v25 = vld [vmem:[#allocation2 + $0x930] sm:$0xff] }
  0x91   :  { %2673 = vmatpush3.bf16.msra.mxu1 %v2672_v31  ;;  %v2692_v31 = vpack.c.bf16 %v286_v24, %v285_v22  ;;  %v312_v24 = vld [vmem:[#allocation2 + $0x838] sm:$0xff]  ;;  %v403_v40 = vld [vmem:[#allocation2 + $0xb10] sm:$0xff] }
  0x92   :  { %2675 = vmatprep.subr.bf16.mxu1 %v2674_v37  ;;  %v2694_v37 = vpack.c.bf16 %v304_v28, %v303_v27  ;;  %v344_v27 = vld [vmem:[#allocation2 + $0x938] sm:$0xff]  ;;  %v329_v28 = vld [vmem:[#allocation2 + $0x8c0] sm:$0xff] }
  0x93   :  { %2645 = vmatpush3.bf16.msra.mxu0 %v2644_v43  ;;  %v644_v43 = vcombine.high %v45_v30, %v45_v30  ;;  %v361_v30 = vld [vmem:[#allocation2 + $0x9c0] sm:$0xff] }
  0x94   :  { %2647 = vmatprep.subr.bf16.mxu0 %v2646_v44  ;;  %v2696_v44 = vpack.c.bf16 %v288_v38, %v287_v36  ;;  %v313_v36 = vld [vmem:[#allocation2 + $0x840] sm:$0xff] }
  0x95   :  { %2677 = vmatpush3.bf16.msra.mxu1 %v2676_v52  ;;  %v2664_v52 = vpack.c.bf16 %v256_v35, %v255_v34  ;;  %v2744_v34 = vpack.c.bf16 %v344_v27, %v343_v25  ;;  %v345_v38 = vld [vmem:[#allocation2 + $0x940] sm:$0xff]  ;;  %v370_v25 = vld [vmem:[#allocation2 + $0xa08] sm:$0xff] }
  0x96   :  { %2679 = vmatprep.subr.bf16.mxu1 %v2678_v49  ;;  %v337_v49 = vld [vmem:[#allocation2 + $0x900] sm:$0xff] }
  0x97   :  { %2649 = vmatpush3.bf16.msra.mxu0 %v2648_v56  ;;  %v355_v56 = vld [vmem:[#allocation2 + $0x990] sm:$0xff]  ;;  %v2732_v59 = vpack.c.bf16 %v338_v51, %v337_v49  ;;  %v316_v49 = vld [vmem:[#allocation2 + $0x858] sm:$0xff] }
  0x98   :  { %2651 = vmatprep.subr.bf16.mxu0 %v2650_v58  ;;  %v3147_v58 = vrot.slane %v644_v43, %v3090_v13  ;;  %v363_v43 = vld [vmem:[#allocation2 + $0x9d0] sm:$0xff] }
  0x99   :  { %2681 = vmatpush3.bf16.msra.mxu1 %v2680_v57  ;;  %v356_v57 = vld [vmem:[#allocation2 + $0x998] sm:$0xff] }
  0x9a   :  { %2683 = vmatprep.subr.bf16.mxu1 %v2682_v61  ;;  %v307_v61 = vld [vmem:[#allocation2 + $0x810] sm:$0xff]  ;;  %v2734_v0 = vpack.c.bf16 %v356_v57, %v355_v56  ;;  %v660_v6 = vcombine.high %v3147_v58, %v3147_v58  ;;  %v334_v56 = vld [vmem:[#allocation2 + $0x8e8] sm:$0xff]  ;;  %v365_v57 = vld [vmem:[#allocation2 + $0x9e0] sm:$0xff] }
  0x9b   :  { %2653 = vmatpush3.bf16.msra.mxu0 %v2652_v2  ;;  %v326_v2 = vld [vmem:[#allocation2 + $0x8a8] sm:$0xff]  ;;  %v2704_v7 = vpack.c.bf16 %v308_v62, %v307_v61  ;;  %v2722_v61 = vpack.c.bf16 %v334_v56, %v333_v54  ;;  %v317_v62 = vld [vmem:[#allocation2 + $0x860] sm:$0xff] }
  0x9c   :  { %2655 = vmatprep.subr.bf16.mxu0 %v2654_v4  ;;  %v357_v4 = vld [vmem:[#allocation2 + $0x9a0] sm:$0xff]  ;;  %v2706_v9 = vpack.c.bf16 %v326_v2, %v325_v1  ;;  %v350_v1 = vld [vmem:[#allocation2 + $0x968] sm:$0xff]  ;;  %v335_v2 = vld [vmem:[#allocation2 + $0x8f0] sm:$0xff] }
  0x9d   :  { %2685 = vmatpush3.bf16.msra.mxu1 %v2684_v3  ;;  %v659_v3 = vcombine.high %v3144_v55, %v3144_v55  ;;  %v2738_v16 = vpack.c.bf16 %v358_v5, %v357_v4  ;;  %v367_v4 = vld [vmem:[#allocation2 + $0x9f0] sm:$0xff]  ;;  %v368_v5 = vld [vmem:[#allocation2 + $0x9f8] sm:$0xff]  ;;  %v373_v54 = vld [vmem:[#allocation2 + $0xa20] sm:$0xff] }
  0x9e   :  { %2687 = vmatprep.subr.bf16.mxu1 %v2686_v8  ;;  %v2736_v8 = vpack.c.bf16 %v340_v45, %v339_v63  ;;  %v318_v63 = vld [vmem:[#allocation2 + $0x868] sm:$0xff] }
  0x9f   :  { %2657 = vmatpush3.bf16.msra.mxu0 %v2656_v17  ;;  %v342_v17 = vld [vmem:[#allocation2 + $0x928] sm:$0xff] }
  0xa0   :  { %2659 = vmatprep.subr.bf16.mxu0 %v2658_v19  ;;  %v359_v19 = vld [vmem:[#allocation2 + $0x9b0] sm:$0xff]  ;;  %v374_v56 = vld [vmem:[#allocation2 + $0xa28] sm:$0xff] }
  0xa1   :  { %2689 = vmatpush3.bf16.msra.mxu1 %v2688_v18  ;;  %v328_v18 = vld [vmem:[#allocation2 + $0x8b8] sm:$0xff]  ;;  %v2742_v26 = vpack.c.bf16 %v360_v20, %v359_v19  ;;  %v417_v19 = vld [vmem:[#allocation2 + $0xb80] sm:$0xff]  ;;  %v418_v20 = vld [vmem:[#allocation2 + $0xb88] sm:$0xff] }
  0xa2   :  { %2691 = vmatprep.subr.bf16.mxu1 %v2690_v23  ;;  %v311_v23 = vld [vmem:[#allocation2 + $0x830] sm:$0xff]  ;;  %v2794_v27 = vpack.c.bf16 %v418_v20, %v417_v19  ;;  %v396_v20 = vld [vmem:[#allocation2 + $0xad8] sm:$0xff] }
  0xa3   :  { %2661 = vmatpush3.bf16.msra.mxu0 %v2660_v29  ;;  %v330_v29 = vld [vmem:[#allocation2 + $0x8c8] sm:$0xff]  ;;  %v395_v19 = vld [vmem:[#allocation2 + $0xad0] sm:$0xff] }
  0xa4   :  { %2663 = vmatprep.subr.bf16.mxu0 %v2662_v32  ;;  %v2712_v32 = vpack.c.bf16 %v312_v24, %v311_v23  ;;  %v2714_v35 = vpack.c.bf16 %v330_v29, %v329_v28  ;;  %v369_v24 = vld [vmem:[#allocation2 + $0xa00] sm:$0xff]  ;;  %v402_v28 = vld [vmem:[#allocation2 + $0xb08] sm:$0xff]  ;;  %v387_v29 = vld [vmem:[#allocation2 + $0xa90] sm:$0xff] }
  0xa5   :  { %2693 = vmatpush3.bf16.msra.mxu1 %v2692_v31  ;;  %v362_v31 = vld [vmem:[#allocation2 + $0x9c8] sm:$0xff] }
  0xa6   :  { %2695 = vmatprep.subr.bf16.mxu1 %v2694_v37  ;;  %v314_v37 = vld [vmem:[#allocation2 + $0x848] sm:$0xff]  ;;  %v2746_v42 = vpack.c.bf16 %v362_v31, %v361_v30  ;;  %v388_v30 = vld [vmem:[#allocation2 + $0xa98] sm:$0xff] }
  0xa7   :  { %2665 = vmatpush3.bf16.msra.mxu0 %v2664_v52  ;;  %v364_v52 = vld [vmem:[#allocation2 + $0x9d8] sm:$0xff] }
  0xa8   :  { %2699 = vmatprep.subr.bf16.mxu0 %v2698_v46  ;;  %v2748_v46 = vpack.c.bf16 %v346_v39, %v345_v38  ;;  %v2750_v51 = vpack.c.bf16 %v364_v52, %v363_v43  ;;  %v2766_v38 = vpack.c.bf16 %v388_v30, %v387_v29  ;;  %v372_v39 = vld [vmem:[#allocation2 + $0xa18] sm:$0xff]  ;;  %v389_v52 = vld [vmem:[#allocation2 + $0xaa0] sm:$0xff] }
  0xa9   :  { %2697 = vmatpush3.bf16.msra.mxu1 %v2696_v44  ;;  %v2716_v44 = vpack.c.bf16 %v314_v37, %v313_v36  ;;  %v2764_v36 = vpack.c.bf16 %v370_v25, %v369_v24  ;;  %v404_v43 = vld [vmem:[#allocation2 + $0xb18] sm:$0xff]  ;;  %v2782_v24 = vpack.c.bf16 %v396_v20, %v395_v19  ;;  %v379_v25 = vld [vmem:[#allocation2 + $0xa50] sm:$0xff]  ;;  %v397_v30 = vld [vmem:[#allocation2 + $0xae0] sm:$0xff] }
  0xaa   :  { %2731 = vmatprep.subr.bf16.mxu1 %v2730_v50  ;;  %1229 = vmatmul.mubr.f32.vlgmr.msra.gmra.mrb[6].mxu0 %v3129_v11  ;;  %v327_v11 = vld [vmem:[#allocation2 + $0x8b0] sm:$0xff]  ;;  %v412_v29 = vld [vmem:[#allocation2 + $0xb58] sm:$0xff] }
  0xab   :  { %2701 = vmatpush3.bf16.msra.mxu0 %v2700_v33  ;;  %1368 = vmatprep.mubr.f32.mxu0 %v659_v3  ;;  %v2710_v22 = vpack.c.bf16 %v328_v18, %v327_v11  ;;  %v347_v50 = vld [vmem:[#allocation2 + $0x950] sm:$0xff]  ;;  %v366_v33 = vld [vmem:[#allocation2 + $0x9e8] sm:$0xff]  ;;  %v336_v3 = vld [vmem:[#allocation2 + $0x8f8] sm:$0xff] }
  0xac   :  { %1299 = vmatmul.mubr.f32.vlgmr.msra.gmra.mrb[6].mxu1 %v3132_v15  ;;  %2703 = vmatprep.subr.bf16.mxu0 %v2702_v60  ;;  %v2740_v15 = vpack.c.bf16 %v342_v17, %v341_v14  ;;  %v2752_v60 = vpack.c.bf16 %v348_v53, %v347_v50  ;;  %v2754_v45 = vpack.c.bf16 %v366_v33, %v365_v57  ;;  %v351_v14 = vld [vmem:[#allocation2 + $0x970] sm:$0xff]  ;;  %v352_v17 = vld [vmem:[#allocation2 + $0x978] sm:$0xff]  ;;  %v385_v11 = vld [vmem:[#allocation2 + $0xa80] sm:$0xff] }
  0xad   :  { %2733 = vmatpush3.bf16.msra.mxu1 %v2732_v59  ;;  %1438 = vmatprep.mubr.f32.mxu1 %v660_v6  ;;  %v2720_v59 = vpack.c.bf16 %v316_v49, %v315_v48  ;;  %v2724_v6 = vpack.c.bf16 %v318_v63, %v317_v62  ;;  %v386_v18 = vld [vmem:[#allocation2 + $0xa88] sm:$0xff]  ;;  %v405_v57 = vld [vmem:[#allocation2 + $0xb20] sm:$0xff]  ;;  %v424_v62 = vld [vmem:[#allocation2 + $0xbb8] sm:$0xff]  ;;  %v2772_v63 = vpack.c.bf16 %v374_v56, %v373_v54 }
  0xae   :  { %2735 = vmatprep.subr.bf16.mxu1 %v2734_v0  ;;  %v349_v0 = vld [vmem:[#allocation2 + $0x960] sm:$0xff]  ;;  %v2762_v23 = vpack.c.bf16 %v386_v18, %v385_v11  ;;  %v422_v48 = vld [vmem:[#allocation2 + $0xba8] sm:$0xff]  ;;  %v383_v54 = vld [vmem:[#allocation2 + $0xa70] sm:$0xff] }
  0xaf   :  { %2705 = vmatpush3.bf16.msra.mxu0 %v2704_v7  ;;  %v46_v7 = vld [vmem:[%s3214_s0 + $0x28] sm:$0xff]  ;;  %v384_v56 = vld [vmem:[#allocation2 + $0xa78] sm:$0xff]  ;;  %v467_v19 = vld [vmem:[#allocation2 + $0xd10] sm:$0xff] }
  0xb0   :  { %2707 = vmatprep.subr.bf16.mxu0 %v2706_v9  ;;  %v2726_v9 = vpack.c.bf16 %v336_v3, %v335_v2  ;;  %v3159_v31 = vrot.slane %v46_v7, %v3090_v13  ;;  %v407_v2 = vld [vmem:[#allocation2 + $0xb30] sm:$0xff]  ;;  %v410_v18 = vld [vmem:[#allocation2 + $0xb48] sm:$0xff] }
  0xb1   :  { %2737 = vmatpush3.bf16.msra.mxu1 %v2736_v8  ;;  %v2756_v8 = vpack.c.bf16 %v350_v1, %v349_v0  ;;  %v376_v1 = vld [vmem:[#allocation2 + $0xa38] sm:$0xff] }
  0xb2   :  { %2739 = vmatprep.subr.bf16.mxu1 %v2738_v16  ;;  %v2758_v16 = vpack.c.bf16 %v368_v5, %v367_v4  ;;  %v408_v4 = vld [vmem:[#allocation2 + $0xb38] sm:$0xff]  ;;  %v393_v5 = vld [vmem:[#allocation2 + $0xac0] sm:$0xff] }
  0xb3   :  { %2709 = vmatpush3.bf16.msra.mxu0 %v2708_v21  ;;  %v661_v21 = vcombine.high %v46_v7, %v46_v7  ;;  %v425_v7 = vld [vmem:[#allocation2 + $0xbc0] sm:$0xff] }
  0xb4   :  { %2711 = vmatprep.subr.bf16.mxu0 %v2710_v22  ;;  %v2760_v22 = vpack.c.bf16 %v352_v17, %v351_v14  ;;  %v377_v14 = vld [vmem:[#allocation2 + $0xa40] sm:$0xff] }
  0xb5   :  { %2741 = vmatpush3.bf16.msra.mxu1 %v2740_v15  ;;  %v2728_v15 = vpack.c.bf16 %v320_v12, %v319_v10  ;;  %v2808_v10 = vpack.c.bf16 %v408_v4, %v407_v2  ;;  %v409_v17 = vld [vmem:[#allocation2 + $0xb40] sm:$0xff]  ;;  %v434_v2 = vld [vmem:[#allocation2 + $0xc08] sm:$0xff] }
  0xb6   :  { %2743 = vmatprep.subr.bf16.mxu1 %v2742_v26  ;;  %v401_v26 = vld [vmem:[#allocation2 + $0xb00] sm:$0xff] }
  0xb7   :  { %2713 = vmatpush3.bf16.msra.mxu0 %v2712_v32  ;;  %v419_v32 = vld [vmem:[#allocation2 + $0xb90] sm:$0xff]  ;;  %v2796_v37 = vpack.c.bf16 %v402_v28, %v401_v26  ;;  %v380_v26 = vld [vmem:[#allocation2 + $0xa58] sm:$0xff] }
  0xb8   :  { %2715 = vmatprep.subr.bf16.mxu0 %v2714_v35  ;;  %v3162_v35 = vrot.slane %v661_v21, %v3090_v13  ;;  %v427_v21 = vld [vmem:[#allocation2 + $0xbd0] sm:$0xff] }
  0xb9   :  { %2745 = vmatpush3.bf16.msra.mxu1 %v2744_v34  ;;  %v420_v34 = vld [vmem:[#allocation2 + $0xb98] sm:$0xff] }
  0xba   :  { %2747 = vmatprep.subr.bf16.mxu1 %v2746_v42  ;;  %v371_v42 = vld [vmem:[#allocation2 + $0xa10] sm:$0xff]  ;;  %v2798_v41 = vpack.c.bf16 %v420_v34, %v419_v32  ;;  %v677_v49 = vcombine.high %v3162_v35, %v3162_v35  ;;  %v398_v32 = vld [vmem:[#allocation2 + $0xae8] sm:$0xff]  ;;  %v429_v34 = vld [vmem:[#allocation2 + $0xbe0] sm:$0xff] }
  0xbb   :  { %2717 = vmatpush3.bf16.msra.mxu0 %v2716_v44  ;;  %v390_v44 = vld [vmem:[#allocation2 + $0xaa8] sm:$0xff]  ;;  %v2768_v50 = vpack.c.bf16 %v372_v39, %v371_v42  ;;  %v2786_v42 = vpack.c.bf16 %v398_v32, %v397_v30  ;;  %v381_v39 = vld [vmem:[#allocation2 + $0xa60] sm:$0xff] }
  0xbc   :  { %2719 = vmatprep.subr.bf16.mxu0 %v2718_v47  ;;  %v421_v47 = vld [vmem:[#allocation2 + $0xba0] sm:$0xff]  ;;  %v2770_v53 = vpack.c.bf16 %v390_v44, %v389_v52  ;;  %v414_v52 = vld [vmem:[#allocation2 + $0xb68] sm:$0xff]  ;;  %v399_v44 = vld [vmem:[#allocation2 + $0xaf0] sm:$0xff] }
  0xbd   :  { %2749 = vmatpush3.bf16.msra.mxu1 %v2748_v46  ;;  %v676_v46 = vcombine.high %v3159_v31, %v3159_v31  ;;  %v2802_v33 = vpack.c.bf16 %v422_v48, %v421_v47  ;;  %v431_v47 = vld [vmem:[#allocation2 + $0xbf0] sm:$0xff]  ;;  %v432_v48 = vld [vmem:[#allocation2 + $0xbf8] sm:$0xff]  ;;  %v437_v30 = vld [vmem:[#allocation2 + $0xc20] sm:$0xff] }
  0xbe   :  { %2751 = vmatprep.subr.bf16.mxu1 %v2750_v51  ;;  %v2800_v51 = vpack.c.bf16 %v404_v43, %v403_v40  ;;  %v382_v40 = vld [vmem:[#allocation2 + $0xa68] sm:$0xff] }
  0xbf   :  { %2721 = vmatpush3.bf16.msra.mxu0 %v2720_v59  ;;  %v406_v59 = vld [vmem:[#allocation2 + $0xb28] sm:$0xff] }
  0xc0   :  { %2723 = vmatprep.subr.bf16.mxu0 %v2722_v61  ;;  %v423_v61 = vld [vmem:[#allocation2 + $0xbb0] sm:$0xff]  ;;  %v438_v32 = vld [vmem:[#allocation2 + $0xc28] sm:$0xff] }
  0xc1   :  { %2753 = vmatpush3.bf16.msra.mxu1 %v2752_v60  ;;  %v392_v60 = vld [vmem:[#allocation2 + $0xab8] sm:$0xff]  ;;  %v2806_v3 = vpack.c.bf16 %v424_v62, %v423_v61  ;;  %v481_v61 = vld [vmem:[#allocation2 + $0xd80] sm:$0xff]  ;;  %v482_v62 = vld [vmem:[#allocation2 + $0xd88] sm:$0xff] }
  0xc2   :  { %2755 = vmatprep.subr.bf16.mxu1 %v2754_v45  ;;  %v375_v45 = vld [vmem:[#allocation2 + $0xa30] sm:$0xff]  ;;  %v2858_v4 = vpack.c.bf16 %v482_v62, %v481_v61  ;;  %v460_v62 = vld [vmem:[#allocation2 + $0xcd8] sm:$0xff] }
  0xc3   :  { %2725 = vmatpush3.bf16.msra.mxu0 %v2724_v6  ;;  %v394_v6 = vld [vmem:[#allocation2 + $0xac8] sm:$0xff]  ;;  %v459_v61 = vld [vmem:[#allocation2 + $0xcd0] sm:$0xff] }
  0xc4   :  { %2727 = vmatprep.subr.bf16.mxu0 %v2726_v9  ;;  %v2776_v9 = vpack.c.bf16 %v376_v1, %v375_v45  ;;  %v2778_v12 = vpack.c.bf16 %v394_v6, %v393_v5  ;;  %v433_v1 = vld [vmem:[#allocation2 + $0xc00] sm:$0xff]  ;;  %v466_v5 = vld [vmem:[#allocation2 + $0xd08] sm:$0xff]  ;;  %v451_v6 = vld [vmem:[#allocation2 + $0xc90] sm:$0xff] }
  0xc5   :  { %2757 = vmatpush3.bf16.msra.mxu1 %v2756_v8  ;;  %v426_v8 = vld [vmem:[#allocation2 + $0xbc8] sm:$0xff] }
  0xc6   :  { %2759 = vmatprep.subr.bf16.mxu1 %v2758_v16  ;;  %v378_v16 = vld [vmem:[#allocation2 + $0xa48] sm:$0xff]  ;;  %v2810_v11 = vpack.c.bf16 %v426_v8, %v425_v7  ;;  %v452_v7 = vld [vmem:[#allocation2 + $0xc98] sm:$0xff] }
  0xc7   :  { %2729 = vmatpush3.bf16.msra.mxu0 %v2728_v15  ;;  %v428_v15 = vld [vmem:[#allocation2 + $0xbd8] sm:$0xff] }
  0xc8   :  { %2763 = vmatprep.subr.bf16.mxu0 %v2762_v23  ;;  %v2812_v23 = vpack.c.bf16 %v410_v18, %v409_v17  ;;  %v2814_v28 = vpack.c.bf16 %v428_v15, %v427_v21  ;;  %v2830_v17 = vpack.c.bf16 %v452_v7, %v451_v6  ;;  %v436_v18 = vld [vmem:[#allocation2 + $0xc18] sm:$0xff]  ;;  %v453_v15 = vld [vmem:[#allocation2 + $0xca0] sm:$0xff] }
  0xc9   :  { %2761 = vmatpush3.bf16.msra.mxu1 %v2760_v22  ;;  %v2780_v22 = vpack.c.bf16 %v378_v16, %v377_v14  ;;  %v2828_v14 = vpack.c.bf16 %v434_v2, %v433_v1  ;;  %v468_v21 = vld [vmem:[#allocation2 + $0xd18] sm:$0xff]  ;;  %v2846_v1 = vpack.c.bf16 %v460_v62, %v459_v61  ;;  %v443_v2 = vld [vmem:[#allocation2 + $0xc50] sm:$0xff]  ;;  %v461_v7 = vld [vmem:[#allocation2 + $0xce0] sm:$0xff] }
  0xca   :  { %2795 = vmatprep.subr.bf16.mxu1 %v2794_v27  ;;  %1369 = vmatmul.mubr.f32.vlgmr.msra.gmra.mrb[8].mxu0 %v3144_v55  ;;  %v391_v55 = vld [vmem:[#allocation2 + $0xab0] sm:$0xff]  ;;  %v476_v6 = vld [vmem:[#allocation2 + $0xd58] sm:$0xff] }
  0xcb   :  { %2765 = vmatpush3.bf16.msra.mxu0 %v2764_v36  ;;  %1508 = vmatprep.mubr.f32.mxu0 %v676_v46  ;;  %v2774_v0 = vpack.c.bf16 %v392_v60, %v391_v55  ;;  %v411_v27 = vld [vmem:[#allocation2 + $0xb50] sm:$0xff]  ;;  %v430_v36 = vld [vmem:[#allocation2 + $0xbe8] sm:$0xff]  ;;  %v400_v46 = vld [vmem:[#allocation2 + $0xaf8] sm:$0xff] }
  0xcc   :  { %1439 = vmatmul.mubr.f32.vlgmr.msra.gmra.mrb[8].mxu1 %v3147_v58  ;;  %2767 = vmatprep.subr.bf16.mxu0 %v2766_v38  ;;  %v2804_v58 = vpack.c.bf16 %v406_v59, %v405_v57  ;;  %v2816_v38 = vpack.c.bf16 %v412_v29, %v411_v27  ;;  %v2818_v43 = vpack.c.bf16 %v430_v36, %v429_v34  ;;  %v415_v57 = vld [vmem:[#allocation2 + $0xb70] sm:$0xff]  ;;  %v416_v59 = vld [vmem:[#allocation2 + $0xb78] sm:$0xff]  ;;  %v449_v55 = vld [vmem:[#allocation2 + $0xc80] sm:$0xff] }
  0xcd   :  { %2797 = vmatpush3.bf16.msra.mxu1 %v2796_v37  ;;  %1578 = vmatprep.mubr.f32.mxu1 %v677_v49  ;;  %v2784_v37 = vpack.c.bf16 %v380_v26, %v379_v25  ;;  %v2788_v49 = vpack.c.bf16 %v382_v40, %v381_v39  ;;  %v450_v60 = vld [vmem:[#allocation2 + $0xc88] sm:$0xff]  ;;  %v469_v34 = vld [vmem:[#allocation2 + $0xd20] sm:$0xff]  ;;  %v488_v39 = vld [vmem:[#allocation2 + $0xdb8] sm:$0xff]  ;;  %v2836_v40 = vpack.c.bf16 %v438_v32, %v437_v30 }
  0xce   :  { %2799 = vmatprep.subr.bf16.mxu1 %v2798_v41  ;;  %v413_v41 = vld [vmem:[#allocation2 + $0xb60] sm:$0xff]  ;;  %v2826_v45 = vpack.c.bf16 %v450_v60, %v449_v55  ;;  %v486_v25 = vld [vmem:[#allocation2 + $0xda8] sm:$0xff]  ;;  %v447_v30 = vld [vmem:[#allocation2 + $0xc70] sm:$0xff] }
  0xcf   :  { %2769 = vmatpush3.bf16.msra.mxu0 %v2768_v50  ;;  %v47_v50 = vld [vmem:[%s3214_s0 + $0x30] sm:$0xff]  ;;  %v474_v60 = vld [vmem:[#allocation2 + $0xd48] sm:$0xff]  ;;  %v448_v32 = vld [vmem:[#allocation2 + $0xc78] sm:$0xff] }
  0xd0   :  { %2771 = vmatprep.subr.bf16.mxu0 %v2770_v53  ;;  %v2790_v53 = vpack.c.bf16 %v400_v46, %v399_v44  ;;  %v3174_v8 = vrot.slane %v47_v50, %v3090_v13  ;;  %v471_v44 = vld [vmem:[#allocation2 + $0xd30] sm:$0xff] }
  0xd1   :  { %2801 = vmatpush3.bf16.msra.mxu1 %v2800_v51  ;;  %v2820_v51 = vpack.c.bf16 %v414_v52, %v413_v41  ;;  %v440_v52 = vld [vmem:[#allocation2 + $0xc38] sm:$0xff]  ;;  %v531_v61 = vld [vmem:[#allocation2 + $0xf10] sm:$0xff] }
  0xd2   :  { %2803 = vmatprep.subr.bf16.mxu1 %v2802_v33  ;;  %v2822_v33 = vpack.c.bf16 %v432_v48, %v431_v47  ;;  %v472_v47 = vld [vmem:[#allocation2 + $0xd38] sm:$0xff]  ;;  %v457_v48 = vld [vmem:[#allocation2 + $0xcc0] sm:$0xff] }
  0xd3   :  { %2773 = vmatpush3.bf16.msra.mxu0 %v2772_v63  ;;  %v678_v63 = vcombine.high %v47_v50, %v47_v50  ;;  %v489_v50 = vld [vmem:[#allocation2 + $0xdc0] sm:$0xff] }
  0xd4   :  { %2775 = vmatprep.subr.bf16.mxu0 %v2774_v0  ;;  %v2824_v0 = vpack.c.bf16 %v416_v59, %v415_v57  ;;  %v441_v57 = vld [vmem:[#allocation2 + $0xc40] sm:$0xff] }
  0xd5   :  { %2805 = vmatpush3.bf16.msra.mxu1 %v2804_v58  ;;  %v2792_v58 = vpack.c.bf16 %v384_v56, %v383_v54  ;;  %v2872_v54 = vpack.c.bf16 %v472_v47, %v471_v44  ;;  %v473_v59 = vld [vmem:[#allocation2 + $0xd40] sm:$0xff]  ;;  %v498_v44 = vld [vmem:[#allocation2 + $0xe08] sm:$0xff] }
  0xd6   :  { %2807 = vmatprep.subr.bf16.mxu1 %v2806_v3  ;;  %v465_v3 = vld [vmem:[#allocation2 + $0xd00] sm:$0xff] }
  0xd7   :  { %2777 = vmatpush3.bf16.msra.mxu0 %v2776_v9  ;;  %v483_v9 = vld [vmem:[#allocation2 + $0xd90] sm:$0xff]  ;;  %v2860_v16 = vpack.c.bf16 %v466_v5, %v465_v3  ;;  %v444_v3 = vld [vmem:[#allocation2 + $0xc58] sm:$0xff] }
  0xd8   :  { %2779 = vmatprep.subr.bf16.mxu0 %v2778_v12  ;;  %v3177_v12 = vrot.slane %v678_v63, %v3090_v13  ;;  %v491_v63 = vld [vmem:[#allocation2 + $0xdd0] sm:$0xff] }
  0xd9   :  { %2809 = vmatpush3.bf16.msra.mxu1 %v2808_v10  ;;  %v484_v10 = vld [vmem:[#allocation2 + $0xd98] sm:$0xff] }
  0xda   :  { %2811 = vmatprep.subr.bf16.mxu1 %v2810_v11  ;;  %v435_v11 = vld [vmem:[#allocation2 + $0xc10] sm:$0xff]  ;;  %v2862_v20 = vpack.c.bf16 %v484_v10, %v483_v9  ;;  %v694_v26 = vcombine.high %v3177_v12, %v3177_v12  ;;  %v462_v9 = vld [vmem:[#allocation2 + $0xce8] sm:$0xff]  ;;  %v493_v10 = vld [vmem:[#allocation2 + $0xde0] sm:$0xff] }
  0xdb   :  { %2781 = vmatpush3.bf16.msra.mxu0 %v2780_v22  ;;  %v454_v22 = vld [vmem:[#allocation2 + $0xca8] sm:$0xff]  ;;  %v2832_v27 = vpack.c.bf16 %v436_v18, %v435_v11  ;;  %v2850_v11 = vpack.c.bf16 %v462_v9, %v461_v7  ;;  %v445_v18 = vld [vmem:[#allocation2 + $0xc60] sm:$0xff] }
  0xdc   :  { %2783 = vmatprep.subr.bf16.mxu0 %v2782_v24  ;;  %v485_v24 = vld [vmem:[#allocation2 + $0xda0] sm:$0xff]  ;;  %v2834_v29 = vpack.c.bf16 %v454_v22, %v453_v15  ;;  %v478_v15 = vld [vmem:[#allocation2 + $0xd68] sm:$0xff]  ;;  %v463_v22 = vld [vmem:[#allocation2 + $0xcf0] sm:$0xff] }
  0xdd   :  { %2813 = vmatpush3.bf16.msra.mxu1 %v2812_v23  ;;  %v693_v23 = vcombine.high %v3174_v8, %v3174_v8  ;;  %v2866_v36 = vpack.c.bf16 %v486_v25, %v485_v24  ;;  %v495_v24 = vld [vmem:[#allocation2 + $0xdf0] sm:$0xff]  ;;  %v496_v25 = vld [vmem:[#allocation2 + $0xdf8] sm:$0xff]  ;;  %v502_v7 = vld [vmem:[#allocation2 + $0xe28] sm:$0xff] }
  0xde   :  { %2815 = vmatprep.subr.bf16.mxu1 %v2814_v28  ;;  %v2864_v28 = vpack.c.bf16 %v468_v21, %v467_v19  ;;  %v446_v19 = vld [vmem:[#allocation2 + $0xc68] sm:$0xff]  ;;  %v533_v9 = vld [vmem:[#allocation2 + $0xf20] sm:$0xff] }
  0xdf   :  { %2785 = vmatpush3.bf16.msra.mxu0 %v2784_v37  ;;  %v470_v37 = vld [vmem:[#allocation2 + $0xd28] sm:$0xff] }
  0xe0   :  { %2787 = vmatprep.subr.bf16.mxu0 %v2786_v42  ;;  %v487_v42 = vld [vmem:[#allocation2 + $0xdb0] sm:$0xff] }
  0xe1   :  { %2817 = vmatpush3.bf16.msra.mxu1 %v2816_v38  ;;  %v456_v38 = vld [vmem:[#allocation2 + $0xcb8] sm:$0xff]  ;;  %v2870_v46 = vpack.c.bf16 %v488_v39, %v487_v42  ;;  %v545_v42 = vld [vmem:[#allocation2 + $0xf80] sm:$0xff]  ;;  %v546_v39 = vld [vmem:[#allocation2 + $0xf88] sm:$0xff] }
  0xe2   :  { %2819 = vmatprep.subr.bf16.mxu1 %v2818_v43  ;;  %v439_v43 = vld [vmem:[#allocation2 + $0xc30] sm:$0xff]  ;;  %v2922_v47 = vpack.c.bf16 %v546_v39, %v545_v42  ;;  %v524_v42 = vld [vmem:[#allocation2 + $0xed8] sm:$0xff] }
  0xe3   :  { %2789 = vmatpush3.bf16.msra.mxu0 %v2788_v49  ;;  %v458_v49 = vld [vmem:[#allocation2 + $0xcc8] sm:$0xff]  ;;  %v555_v39 = vld [vmem:[#allocation2 + $0xfd0] sm:$0xff] }
  0xe4   :  { %2791 = vmatprep.subr.bf16.mxu0 %v2790_v53  ;;  %v2840_v53 = vpack.c.bf16 %v440_v52, %v439_v43  ;;  %v2842_v56 = vpack.c.bf16 %v458_v49, %v457_v48  ;;  %v497_v52 = vld [vmem:[#allocation2 + $0xe00] sm:$0xff]  ;;  %v530_v48 = vld [vmem:[#allocation2 + $0xf08] sm:$0xff]  ;;  %v515_v49 = vld [vmem:[#allocation2 + $0xe90] sm:$0xff] }
  0xe5   :  { %2821 = vmatpush3.bf16.msra.mxu1 %v2820_v51  ;;  %v490_v51 = vld [vmem:[#allocation2 + $0xdc8] sm:$0xff] }
  0xe6   :  { %2823 = vmatprep.subr.bf16.mxu1 %v2822_v33  ;;  %v442_v33 = vld [vmem:[#allocation2 + $0xc48] sm:$0xff]  ;;  %v2874_v55 = vpack.c.bf16 %v490_v51, %v489_v50  ;;  %v516_v50 = vld [vmem:[#allocation2 + $0xe98] sm:$0xff] }
  0xe7   :  { %2793 = vmatpush3.bf16.msra.mxu0 %v2792_v58  ;;  %v492_v58 = vld [vmem:[#allocation2 + $0xdd8] sm:$0xff] }
  0xe8   :  { %2827 = vmatprep.subr.bf16.mxu0 %v2826_v45  ;;  %v2876_v45 = vpack.c.bf16 %v474_v60, %v473_v59  ;;  %v2878_v5 = vpack.c.bf16 %v492_v58, %v491_v63  ;;  %v2894_v59 = vpack.c.bf16 %v516_v50, %v515_v49  ;;  %v500_v60 = vld [vmem:[#allocation2 + $0xe18] sm:$0xff]  ;;  %v517_v58 = vld [vmem:[#allocation2 + $0xea0] sm:$0xff]  ;;  %v526_v50 = vld [vmem:[#allocation2 + $0xee8] sm:$0xff] }
  0xe9   :  { %2825 = vmatpush3.bf16.msra.mxu1 %v2824_v0  ;;  %v2844_v0 = vpack.c.bf16 %v442_v33, %v441_v57  ;;  %v2892_v57 = vpack.c.bf16 %v498_v44, %v497_v52  ;;  %v532_v63 = vld [vmem:[#allocation2 + $0xf18] sm:$0xff]  ;;  %v507_v52 = vld [vmem:[#allocation2 + $0xe50] sm:$0xff]  ;;  %v525_v49 = vld [vmem:[#allocation2 + $0xee0] sm:$0xff] }
  0xea   :  { %2859 = vmatprep.subr.bf16.mxu1 %v2858_v4  ;;  %1509 = vmatmul.mubr.f32.vlgmr.msra.gmra.mrb[10].mxu0 %v3159_v31  ;;  %v455_v31 = vld [vmem:[#allocation2 + $0xcb0] sm:$0xff]  ;;  %v508_v44 = vld [vmem:[#allocation2 + $0xe58] sm:$0xff] }
  0xeb   :  { %2829 = vmatpush3.bf16.msra.mxu0 %v2828_v14  ;;  %1648 = vmatprep.mubr.f32.mxu0 %v693_v23  ;;  %v2838_v41 = vpack.c.bf16 %v456_v38, %v455_v31  ;;  %v475_v4 = vld [vmem:[#allocation2 + $0xd50] sm:$0xff]  ;;  %v494_v14 = vld [vmem:[#allocation2 + $0xde8] sm:$0xff]  ;;  %v464_v23 = vld [vmem:[#allocation2 + $0xcf8] sm:$0xff] }
  0xec   :  { %1579 = vmatmul.mubr.f32.vlgmr.msra.gmra.mrb[10].mxu1 %v3162_v35  ;;  %2831 = vmatprep.subr.bf16.mxu0 %v2830_v17  ;;  %v2868_v35 = vpack.c.bf16 %v470_v37, %v469_v34  ;;  %v2880_v17 = vpack.c.bf16 %v476_v6, %v475_v4  ;;  %v2882_v21 = vpack.c.bf16 %v494_v14, %v493_v10  ;;  %v479_v34 = vld [vmem:[#allocation2 + $0xd70] sm:$0xff]  ;;  %v480_v37 = vld [vmem:[#allocation2 + $0xd78] sm:$0xff]  ;;  %v513_v31 = vld [vmem:[#allocation2 + $0xe80] sm:$0xff] }
  0xed   :  { %2861 = vmatpush3.bf16.msra.mxu1 %v2860_v16  ;;  %1718 = vmatprep.mubr.f32.mxu1 %v694_v26  ;;  %v2848_v16 = vpack.c.bf16 %v444_v3, %v443_v2  ;;  %v2852_v26 = vpack.c.bf16 %v446_v19, %v445_v18  ;;  %v514_v38 = vld [vmem:[#allocation2 + $0xe88] sm:$0xff]  ;;  %v2928_v4 = vpack.c.bf16 %v532_v63, %v531_v61  ;;  %v501_v6 = vld [vmem:[#allocation2 + $0xe20] sm:$0xff] }
  0xee   :  { %2863 = vmatprep.subr.bf16.mxu1 %v2862_v20  ;;  %v477_v20 = vld [vmem:[#allocation2 + $0xd60] sm:$0xff]  ;;  %v2890_v43 = vpack.c.bf16 %v514_v38, %v513_v31  ;;  %v534_v14 = vld [vmem:[#allocation2 + $0xf28] sm:$0xff]  ;;  %v2900_v18 = vpack.c.bf16 %v502_v7, %v501_v6  ;;  %v523_v38 = vld [vmem:[#allocation2 + $0xed0] sm:$0xff] }
  0xef   :  { %2833 = vmatpush3.bf16.msra.mxu0 %v2832_v27  ;;  %v48_v27 = vld [vmem:[%s3214_s0 + $0x38] sm:$0xff]  ;;  %v538_v31 = vld [vmem:[#allocation2 + $0xf48] sm:$0xff]  ;;  %v541_v61 = vld [vmem:[#allocation2 + $0xf60] sm:$0xff]  ;;  %s3045_s0 = smov [#allocation7]  }
  0xf0   :  { %2835 = vmatprep.subr.bf16.mxu0 %v2834_v29  ;;  %v2854_v29 = vpack.c.bf16 %v464_v23, %v463_v22  ;;  %v3189_v51 = vrot.slane %v48_v27, %v3090_v13  ;;  %v536_v23 = vld [vmem:[#allocation2 + $0xf38] sm:$0xff]  ;;  %s1871_s26 = sshll.u32 %s3045_s0, 4  ;;  %s1872_s26 = int_to_ptr.vmem [resolvable:$true] %s1871_s26 }
  0xf1   :  { %2865 = vmatpush3.bf16.msra.mxu1 %v2864_v28  ;;  %v2884_v28 = vpack.c.bf16 %v478_v15, %v477_v20  ;;  %v503_v20 = vld [vmem:[#allocation2 + $0xe30] sm:$0xff]  ;;  %s3012_s27 = scalar_lea.vmem %s1872_s26, 32  ;;  %p3017_p3 = scmp.lt.s32.totalorder %s1872_s26, %s1872_s26 }
  0xf2   :  { %2867 = vmatprep.subr.bf16.mxu1 %v2866_v36  ;;  %v2886_v36 = vpack.c.bf16 %v496_v25, %v495_v24  ;;  %v535_v15 = vld [vmem:[#allocation2 + $0xf30] sm:$0xff]  ;;  %v521_v24 = vld [vmem:[#allocation2 + $0xec0] sm:$0xff]  ;;  %v522_v25 = vld [vmem:[#allocation2 + $0xec8] sm:$0xff]  ;;  %p3013_p2 = scmp.ne.s32.totalorder %s1872_s26, %s3012_s27  ;;  %p3018_p4 = scmp.lt.s32.totalorder %s3012_s27, %s3012_s27 }
  0xf3   :  { %2837 = vmatpush3.bf16.msra.mxu0 %v2836_v40  ;;  %v695_v40 = vcombine.high %v48_v27, %v48_v27  ;;  %v554_v27 = vld [vmem:[#allocation2 + $0xfc8] sm:$0xff] }
  0xf4   :  { %2839 = vmatprep.subr.bf16.mxu0 %v2838_v41  ;;  %v2888_v41 = vpack.c.bf16 %v480_v37, %v479_v34  ;;  %v506_v34 = vld [vmem:[#allocation2 + $0xe48] sm:$0xff]  ;;  %p3019_p5 = por %p3018_p4, %p3017_p3 }
  0xf5   :  { %2869 = vmatpush3.bf16.msra.mxu1 %v2868_v35  ;;  %v2856_v35 = vpack.c.bf16 %v448_v32, %v447_v30  ;;  %v2906_v30 = vpack.c.bf16 %v522_v25, %v521_v24  ;;  %v505_v32 = vld [vmem:[#allocation2 + $0xe40] sm:$0xff] }
  0xf6   :  { %2871 = vmatprep.subr.bf16.mxu1 %v2870_v46  ;;  %v529_v46 = vld [vmem:[#allocation2 + $0xf00] sm:$0xff]  ;;  %p3020_p6 = pnand %p3019_p5, %p3013_p2 }
  0xf7   :  { %2841 = vmatpush3.bf16.msra.mxu0 %v2840_v53  ;;  %v547_v53 = vld [vmem:[#allocation2 + $0xf90] sm:$0xff]  ;;  %v2924_v33 = vpack.c.bf16 %v530_v48, %v529_v46  ;;  %v540_v48 = vld [vmem:[#allocation2 + $0xf58] sm:$0xff] }
  0xf8   :  { %2843 = vmatprep.subr.bf16.mxu0 %v2842_v56  ;;  %v3192_v56 = vrot.slane %v695_v40, %v3090_v13  ;;  %v549_v13 = vld [vmem:[#allocation2 + $0xfa0] sm:$0xff]  ;;  %v556_v40 = vld [vmem:[#allocation2 + $0xfd8] sm:$0xff]  ;;  %v539_v46 = vld [vmem:[#allocation2 + $0xf50] sm:$0xff] }
  0xf9   :  { %2873 = vmatpush3.bf16.msra.mxu1 %v2872_v54  ;;  %v548_v54 = vld [vmem:[#allocation2 + $0xf98] sm:$0xff] }
  0xfa   :  { %2875 = vmatprep.subr.bf16.mxu1 %v2874_v55  ;;  %v499_v55 = vld [vmem:[#allocation2 + $0xe10] sm:$0xff]  ;;  %v2926_v62 = vpack.c.bf16 %v548_v54, %v547_v53  ;;  %v711_v2 = vcombine.high %v3192_v56, %v3192_v56  ;;  %v557_v53 = vld [vmem:[#allocation2 + $0xfe0] sm:$0xff]  ;;  %v558_v54 = vld [vmem:[#allocation2 + $0xfe8] sm:$0xff] }
  0xfb   :  { %2845 = vmatpush3.bf16.msra.mxu0 %v2844_v0  ;;  %v518_v0 = vld [vmem:[#allocation2 + $0xea8] sm:$0xff]  ;;  %v2896_v3 = vpack.c.bf16 %v500_v60, %v499_v55  ;;  %v509_v55 = vld [vmem:[#allocation2 + $0xe60] sm:$0xff]  ;;  %v2946_v63 = vpack.c.bf16 %v558_v54, %v557_v53 }
  0xfc   :  { %2847 = vmatprep.subr.bf16.mxu0 %v2846_v1  ;;  %v550_v1 = vld [vmem:[#allocation2 + $0xfa8] sm:$0xff] }
  0xfd   :  { %2877 = vmatpush3.bf16.msra.mxu1 %v2876_v45  ;;  %v710_v45 = vcombine.high %v3189_v51, %v3189_v51  ;;  %v2930_v10 = vpack.c.bf16 %v550_v1, %v549_v13  ;;  %v510_v60 = vld [vmem:[#allocation2 + $0xe68] sm:$0xff]  ;;  %v1881_v13 = vld [vmem:[#allocation5] ss:$0 sm:$0xff] }
  0xfe   :  { %2879 = vmatprep.subr.bf16.mxu1 %v2878_v5  ;;  %v2898_v5 = vpack.c.bf16 %v518_v0, %v517_v58  ;;  %v542_v58 = vld [vmem:[#allocation2 + $0xf68] sm:$0xff]  ;;  %v527_v0 = vld [vmem:[#allocation2 + $0xef0] sm:$0xff]  ;;  %v2916_v7 = vpack.c.bf16 %v510_v60, %v509_v55 }
  0xff   :  { %2849 = vmatpush3.bf16.msra.mxu0 %v2848_v16  ;;  %v520_v16 = vld [vmem:[#allocation2 + $0xeb8] sm:$0xff] }
 0x100   :  { %2851 = vmatprep.subr.bf16.mxu0 %v2850_v11  ;;  %v552_v11 = vld [vmem:[#allocation2 + $0xfb8] sm:$0xff] }
 0x101   :  { %2881 = vmatpush3.bf16.msra.mxu1 %v2880_v17  ;;  %v551_v17 = vld [vmem:[#allocation2 + $0xfb0] sm:$0xff] }
 0x102   :  { %2883 = vmatprep.subr.bf16.mxu1 %v2882_v21  ;;  %v504_v21 = vld [vmem:[#allocation2 + $0xe38] sm:$0xff]  ;;  %v2934_v22 = vpack.c.bf16 %v552_v11, %v551_v17 }
 0x103   :  { %2853 = vmatpush3.bf16.msra.mxu0 %v2852_v26  ;;  %v553_v26 = vld [vmem:[#allocation2 + $0xfc0] sm:$0xff] }
 0x104   :  { %2855 = vmatprep.subr.bf16.mxu0 %v2854_v29  ;;  %v2936_v29 = vpack.c.bf16 %v536_v23, %v535_v15  ;;  %v2938_v37 = vpack.c.bf16 %v554_v27, %v553_v26 }
 0x105   :  { %2885 = vmatpush3.bf16.msra.mxu1 %v2884_v28  ;;  %v2904_v28 = vpack.c.bf16 %v504_v21, %v503_v20 }
 0x106   :  { %2887 = vmatprep.subr.bf16.mxu1 %v2886_v36  ;;  %v537_v36 = vld [vmem:[#allocation2 + $0xf40] sm:$0xff] }
 0x107   :  { %2857 = vmatpush3.bf16.msra.mxu0 %v2856_v35  ;;  %v2908_v35 = vpack.c.bf16 %v506_v34, %v505_v32 }
 0x108   :  { %2891 = vmatprep.subr.bf16.mxu0 %v2890_v43  ;;  %v2910_v43 = vpack.c.bf16 %v524_v42, %v523_v38 }
 0x109   :  { %2889 = vmatpush3.bf16.msra.mxu1 %v2888_v41  ;;  %v2940_v41 = vpack.c.bf16 %v538_v31, %v537_v36 }
 0x10a   :  { %2923 = vmatprep.subr.bf16.mxu1 %v2922_v47  ;;  %1649 = vmatmul.mubr.f32.vlgmr.msra.gmra.mrb[12].mxu0 %v3174_v8  ;;  %v519_v8 = vld [vmem:[#allocation2 + $0xeb0] sm:$0xff]  ;;  %v2942_v47 = vpack.c.bf16 %v556_v40, %v555_v39 }
 0x10b   :  { %2893 = vmatpush3.bf16.msra.mxu0 %v2892_v57  ;;  %1788 = vmatprep.mubr.f32.mxu0 %v710_v45  ;;  %v2902_v19 = vpack.c.bf16 %v520_v16, %v519_v8  ;;  %v2912_v57 = vpack.c.bf16 %v508_v44, %v507_v52  ;;  %v528_v45 = vld [vmem:[#allocation2 + $0xef8] sm:$0xff]  ;;  %v511_v8 = vld [vmem:[#allocation2 + $0xe70] sm:$0xff] }
 0x10c   :  { %1719 = vmatmul.mubr.f32.vlgmr.msra.gmra.mrb[12].mxu1 %v3177_v12  ;;  %2895 = vmatprep.subr.bf16.mxu0 %v2894_v59  ;;  %v2932_v12 = vpack.c.bf16 %v534_v14, %v533_v9  ;;  %v2914_v59 = vpack.c.bf16 %v526_v50, %v525_v49  ;;  %v2918_v14 = vpack.c.bf16 %v528_v45, %v527_v0  ;;  %v512_v16 = vld [vmem:[#allocation2 + $0xe78] sm:$0xff] }
 0x10d   :  { %2925 = vmatpush3.bf16.msra.mxu1 %v2924_v33  ;;  %1858 = vmatprep.mubr.f32.mxu1 %v711_v2  ;;  %v2944_v33 = vpack.c.bf16 %v540_v48, %v539_v46  ;;  %v2920_v20 = vpack.c.bf16 %v512_v16, %v511_v8 }
 0x10e   :  { %2927 = vmatprep.subr.bf16.mxu1 %v2926_v62 }
 0x10f   :  { %2897 = vmatpush3.bf16.msra.mxu0 %v2896_v3  ;;  %v559_v3 = vld [vmem:[#allocation2 + $0xff0] sm:$0xff] }
 0x110   :  { %2899 = vmatprep.subr.bf16.mxu0 %v2898_v5 }
 0x111   :  { %2929 = vmatpush3.bf16.msra.mxu1 %v2928_v4  ;;  %v560_v4 = vld [vmem:[#allocation2 + $0xff8] sm:$0xff] }
 0x112   :  { %2931 = vmatprep.subr.bf16.mxu1 %v2930_v10  ;;  %v2948_v10 = vpack.c.bf16 %v542_v58, %v541_v61  ;;  %v2950_v11 = vpack.c.bf16 %v560_v4, %v559_v3 }
 0x113   :  { %2901 = vmatpush3.bf16.msra.mxu0 %v2900_v18  ;;  %v543_v18 = vld [vmem:[#allocation2 + $0xf70] sm:$0xff] }
 0x114   :  { %2903 = vmatprep.subr.bf16.mxu0 %v2902_v19 }
 0x115   :  { %2933 = vmatpush3.bf16.msra.mxu1 %v2932_v12  ;;  %v544_v12 = vld [vmem:[#allocation2 + $0xf78] sm:$0xff] }
 0x116   :  { %2935 = vmatprep.subr.bf16.mxu1 %v2934_v22  ;;  %v2952_v21 = vpack.c.bf16 %v544_v12, %v543_v18 }
 0x117   :  { %2905 = vmatpush3.bf16.msra.mxu0 %v2904_v28 }
 0x118   :  { %2907 = vmatprep.subr.bf16.mxu0 %v2906_v30 }
 0x119   :  { %2937 = vmatpush3.bf16.msra.mxu1 %v2936_v29 }
 0x11a   :  { %2939 = vmatprep.subr.bf16.mxu1 %v2938_v37 }
 0x11b   :  { %2909 = vmatpush3.bf16.msra.mxu0 %v2908_v35 }
 0x11c   :  { %2911 = vmatprep.subr.bf16.mxu0 %v2910_v43 }
 0x11d   :  { %2941 = vmatpush3.bf16.msra.mxu1 %v2940_v41  ;;  %v1914_v62 = vpop.f32.mrb[0].mxu0 }
 0x11e   :  { %2943 = vmatprep.subr.bf16.mxu1 %v2942_v47  ;;  %v1915_v1 = vpop.f32.mrb[1].mxu0 }
 0x11f   :  { %v1949_v2 = vpop.f32.mrb[0].mxu1  ;;  %v1916_v5 = vadd.f32 %v1915_v1, %v1914_v62  ;;  %2913 = vmatpush3.bf16.msra.mxu0 %v2912_v57 }
 0x120   :  { %v1950_v6 = vpop.f32.mrb[1].mxu1  ;;  %2915 = vmatprep.subr.bf16.mxu0 %v2914_v59 }
 0x121   :  { %v1951_v9 = vadd.f32 %v1950_v6, %v1949_v2  ;;  %2945 = vmatpush3.bf16.msra.mxu1 %v2944_v33  ;;  %v811_v17 = vadd.f32 %v1916_v5, %v1881_v13 }
 0x122   :  { %2947 = vmatprep.subr.bf16.mxu1 %v2946_v63 }
 0x123   :  { %v881_v19 = vadd.f32 %v1951_v9, %v811_v17  ;;  %2917 = vmatpush3.bf16.msra.mxu0 %v2916_v7 }
 0x124   :  { %2919 = vmatprep.subr.bf16.mxu0 %v2918_v14 }
 0x125   :  { %2949 = vmatpush3.bf16.msra.mxu1 %v2948_v10 }
 0x126   :  { %2951 = vmatprep.subr.bf16.mxu1 %v2950_v11 }
 0x127   :  { %2921 = vmatpush3.bf16.msra.mxu0 %v2920_v20 }
 0x129   :  { %2953 = vmatpush3.bf16.msra.mxu1 %v2952_v21 }
 0x12a   :  { %1789 = vmatmul.mubr.f32.vlgmr.msra.gmra.mrb[14].mxu0 %v3189_v51 }
 0x12c   :  { %1859 = vmatmul.mubr.f32.vlgmr.msra.gmra.mrb[14].mxu1 %v3192_v56 }
 0x13d   :  { %v1984_v15 = vpop.f32.mrb[2].mxu0 }
 0x13e   :  { %v1985_v22 = vpop.f32.mrb[3].mxu0 }
 0x13f   :  { %v2019_v23 = vpop.f32.mrb[2].mxu1  ;;  %v1986_v24 = vadd.f32 %v1985_v22, %v1984_v15 }
 0x140   :  { %v2020_v25 = vpop.f32.mrb[3].mxu1 }
 0x141   :  { %v2021_v26 = vadd.f32 %v2020_v25, %v2019_v23  ;;  %v951_v27 = vadd.f32 %v1986_v24, %v881_v19 }
 0x143   :  { %v1021_v28 = vadd.f32 %v2021_v26, %v951_v27 }
 0x15d   :  { %v2054_v29 = vpop.f32.mrb[4].mxu0 }
 0x15e   :  { %v2055_v30 = vpop.f32.mrb[5].mxu0 }
 0x15f   :  { %v2089_v32 = vpop.f32.mrb[4].mxu1  ;;  %v2056_v34 = vadd.f32 %v2055_v30, %v2054_v29 }
 0x160   :  { %v2090_v36 = vpop.f32.mrb[5].mxu1 }
 0x161   :  { %v2091_v37 = vadd.f32 %v2090_v36, %v2089_v32  ;;  %v1091_v31 = vadd.f32 %v2056_v34, %v1021_v28 }
 0x163   :  { %v1161_v38 = vadd.f32 %v2091_v37, %v1091_v31 }
 0x17d   :  { %v2124_v42 = vpop.f32.mrb[6].mxu0 }
 0x17e   :  { %v2125_v51 = vpop.f32.mrb[7].mxu0 }
 0x17f   :  { %v2159_v39 = vpop.f32.mrb[6].mxu1  ;;  %v2126_v56 = vadd.f32 %v2125_v51, %v2124_v42 }
 0x180   :  { %v2160_v40 = vpop.f32.mrb[7].mxu1 }
 0x181   :  { %v2161_v35 = vadd.f32 %v2160_v40, %v2159_v39  ;;  %v1231_v41 = vadd.f32 %v2126_v56, %v1161_v38 }
 0x183   :  { %v1301_v43 = vadd.f32 %v2161_v35, %v1231_v41 }
 0x19d   :  { %v2194_v52 = vpop.f32.mrb[8].mxu0 }
 0x19e   :  { %v2195_v44 = vpop.f32.mrb[9].mxu0 }
 0x19f   :  { %v2229_v46 = vpop.f32.mrb[8].mxu1  ;;  %v2196_v47 = vadd.f32 %v2195_v44, %v2194_v52 }
 0x1a0   :  { %v2230_v48 = vpop.f32.mrb[9].mxu1 }
 0x1a1   :  { %v2231_v49 = vadd.f32 %v2230_v48, %v2229_v46  ;;  %v1371_v50 = vadd.f32 %v2196_v47, %v1301_v43 }
 0x1a3   :  { %v1441_v53 = vadd.f32 %v2231_v49, %v1371_v50 }
 0x1bd   :  { %v2264_v54 = vpop.f32.mrb[10].mxu0 }
 0x1be   :  { %v2265_v57 = vpop.f32.mrb[11].mxu0 }
 0x1bf   :  { %v2299_v33 = vpop.f32.mrb[10].mxu1  ;;  %v2266_v59 = vadd.f32 %v2265_v57, %v2264_v54 }
 0x1c0   :  { %v2300_v55 = vpop.f32.mrb[11].mxu1 }
 0x1c1   :  { %v2301_v60 = vadd.f32 %v2300_v55, %v2299_v33  ;;  %v1511_v61 = vadd.f32 %v2266_v59, %v1441_v53 }
 0x1c3   :  { %v1581_v62 = vadd.f32 %v2301_v60, %v1511_v61 }
 0x1dd   :  { %v2334_v63 = vpop.f32.mrb[12].mxu0 }
 0x1de   :  { %v2335_v58 = vpop.f32.mrb[13].mxu0 }
 0x1df   :  { %v2369_v0 = vpop.f32.mrb[12].mxu1  ;;  %v2336_v45 = vadd.f32 %v2335_v58, %v2334_v63 }
 0x1e0   :  { %v2370_v13 = vpop.f32.mrb[13].mxu1 }
 0x1e1   :  { %v2371_v1 = vadd.f32 %v2370_v13, %v2369_v0  ;;  %v1651_v2 = vadd.f32 %v2336_v45, %v1581_v62 }
 0x1e3   :  { %v1721_v3 = vadd.f32 %v2371_v1, %v1651_v2 }
 0x1fd   :  { %v2404_v4 = vpop.f32.mrb[14].mxu0 }
 0x1fe   :  { %v2405_v5 = vpop.f32.mrb[15].mxu0 }
 0x1ff   :  { %v2439_v6 = vpop.f32.mrb[14].mxu1  ;;  %v2406_v7 = vadd.f32 %v2405_v5, %v2404_v4 }
 0x200   :  { %v2440_v9 = vpop.f32.mrb[15].mxu1 }
 0x201   :  { %v2441_v10 = vadd.f32 %v2440_v9, %v2439_v6  ;;  %v1791_v14 = vadd.f32 %v2406_v7, %v1721_v3 }
 0x203   :  { %v1861_v8 = vadd.f32 %v2441_v10, %v1791_v14 }
 0x205   :  { %1864 = vst [vmem:[#allocation7] sm:$0x3] %v1861_v8 }
 0x206   :  { %3023 = shalt.err (!%p3020_p6)
}
 0x207   :  { %s3024_s30 = scalar_lea.hbm %s3217_s3, 32 }
 0x208   :  { %p3025_p7 = scmp.ne.s32.totalorder %s3217_s3, %s3024_s30  ;;  %p3028_p8 = scmp.lt.u32.totalorder %s3024_s30, %s3217_s3 }
 0x20a   :  { %p3030_p9 = pnand %p3028_p8, %p3025_p7 }
 0x20c   :  { %3033 = shalt.err (!%p3030_p9)
}
 0x20d   :  { %1874 = dma.vmem_to_hbm [thread:$0]  %s1872_s26, 32, %s3217_s3, [#allocation4]  }
 0x20e   :  { %3038 = dma.done.wait [#allocation4], 32  }
 0x20f   :  { %3039 = vsyncadd [#allocation4], 4294967264 }
 0x210   :  { %1878 = vsyncpa [#allocation3], 1 }
 0x211   :  { %1879 = vsyncpa [#allocation6], 1 }
 0x212   :  { %1880 = vsyncpa [#allocation4], 1 }

</bundles_post_ra>
